<compile_context>
chip_gen: v5e
topology: v5e:2x2
jax: 0.10.0
libtpu: 0.0.40
codegen_flags: <defaults>
</compile_context>

<pallas_src>
import functools

import jax
import jax.numpy as jnp
from jax.experimental import pallas as pl
from jax.experimental.pallas import tpu as pltpu


# ----------------------------------------------------------------------------
# Fused Pallas kernel: all layers + all timesteps + final reduction
# ----------------------------------------------------------------------------
def gru_fused_kernel(num_layers, gi0_ref, k_ref, *refs):
    """Fused multi-layer GRU + abs(k * sum_hidden), single invocation (no grid).

    gi0_ref : (seq, B, 3H) f32  -- hoisted layer-0 input pre-activations
    k_ref   : (1, 1) f32 in SMEM
    refs    : layer 0:      w_hh0 (H,3H), b_hh0 (1,3H)
              layers >= 1:  w_ih (H,3H), b_ih (1,3H), w_hh (H,3H), b_hh (1,3H)
              last entry:   out_ref (B, seq) f32
    """
    out_ref = refs[-1]
    wrefs = refs[:-1]
    seq, B, three_h = gi0_ref.shape
    H = three_h // 3
    k = k_ref[0, 0]

    def gru_cell(gi, gh, h_prev):
        # gi/gh: (B, 3H) pre-activations, gate order [r, z, n] (PyTorch).
        g = gi + gh
        r = jax.nn.sigmoid(g[:, 0:H])
        z = jax.nn.sigmoid(g[:, H:2 * H])
        n = jnp.tanh(gi[:, 2 * H:] + r * gh[:, 2 * H:])
        # (1-z)*n + z*h_prev  ==  n + z*(h_prev - n)
        return n + z * (h_prev - n)

    # ------------- layer 0 (input projection already hoisted to XLA) ---------
    w_hh = wrefs[0][...]
    b_hh = wrefs[1][...]
    h = jnp.zeros((B, H), jnp.float32)            # PyTorch default h0 = 0
    h_seq = []
    for t in range(seq):                          # statically unrolled recurrence
        gh = jnp.dot(h, w_hh, preferred_element_type=jnp.float32) + b_hh
        h = gru_cell(gi0_ref[t], gh, h)
        h_seq.append(h)

    # ------------- layers 1 .. L-1 --------------------------------------------
    idx = 2
    for _ in range(1, num_layers):
        w_ih = wrefs[idx][...]
        b_ih = wrefs[idx + 1][...]
        w_hh = wrefs[idx + 2][...]
        b_hh = wrefs[idx + 3][...]
        idx += 4
        # Input projections have no time dependency: issued off the serial chain,
        # one fused (H, 3H) dot per timestep.
        gi_seq = [
            jnp.dot(h_seq[t], w_ih, preferred_element_type=jnp.float32) + b_ih
            for t in range(seq)
        ]
        h = jnp.zeros((B, H), jnp.float32)
        nxt = []
        for t in range(seq):
            gh = jnp.dot(h, w_hh, preferred_element_type=jnp.float32) + b_hh
            h = gru_cell(gi_seq[t], gh, h)
            nxt.append(h)
        h_seq = nxt

    # ------------- fused final reduction: abs(k * sum over hidden) ------------
    for t in range(seq):
        s = jnp.sum(h_seq[t], axis=-1, keepdims=True)        # (B, 1)
        out_ref[:, t:t + 1] = jnp.abs(k * s)


# ----------------------------------------------------------------------------
# Wrappers
# ----------------------------------------------------------------------------
def run_gru_fused(gi0, k, params):
    """gi0: (seq, B, 3H); k: (1, 1); params: per-layer (w_ih, b_ih, w_hh, b_hh).

    Returns (B, seq) f32 = abs(k * sum_hidden(last-layer GRU outputs)).
    """
    seq, B, _ = gi0.shape
    num_layers = len(params)

    weight_args = []
    in_specs = [
        pl.BlockSpec(memory_space=pltpu.MemorySpace.VMEM),    # gi0
        pl.BlockSpec(memory_space=pltpu.MemorySpace.SMEM),    # k (scalar)
    ]
    # Layer 0: only the hidden-side weights enter the kernel (input side hoisted).
    _, _, w_hh0, b_hh0 = params[0]
    weight_args += [w_hh0, b_hh0]
    in_specs += [pl.BlockSpec(memory_space=pltpu.MemorySpace.VMEM)] * 2
    for (w_ih, b_ih, w_hh, b_hh) in params[1:]:
        weight_args += [w_ih, b_ih, w_hh, b_hh]
        in_specs += [pl.BlockSpec(memory_space=pltpu.MemorySpace.VMEM)] * 4

    return pl.pallas_call(
        functools.partial(gru_fused_kernel, num_layers),
        out_shape=jax.ShapeDtypeStruct((B, seq), jnp.float32),
        in_specs=in_specs,
        out_specs=pl.BlockSpec(memory_space=pltpu.MemorySpace.VMEM),
    )(gi0, k, *weight_args)


@jax.jit
def gru_forward(x, params, k):
    """Full module forward.

    x: (batch, seq, input_size) -> (batch, seq, 1)
    matches torch: abs(sum(gru(x.transpose(0,1)), -1).transpose(0,1).unsqueeze(-1) * k)
    """
    w_ih0, b_ih0, _, _ = params[0]
    x_t = jnp.transpose(x, (1, 0, 2)).astype(jnp.float32)        # (seq, B, D)
    # Hoisted, time-independent layer-0 input projection as one XLA matmul.
    gi0 = jnp.einsum('sbd,dg->sbg', x_t, w_ih0) + b_ih0           # (seq, B, 3H)
    out = run_gru_fused(gi0, k, params)                           # (batch, seq)
    return out[:, :, None]                                        # (batch, seq, 1)


# ----------------------------------------------------------------------------
# Deterministic parameter construction (PyTorch-style uniform(-1/sqrt(H), 1/sqrt(H)))
# Weights stored pre-fused/pre-transposed: w_ih (D, 3H), w_hh (H, 3H), biases (1, 3H),
# gate order along the 3H axis = [r, z, n].
# ----------------------------------------------------------------------------
def init_gru_params(key, input_size, hidden_size, num_layers):
    params = []
    bound = 1.0 / (hidden_size ** 0.5)
    for layer in range(num_layers):
        d_in = input_size if layer == 0 else hidden_size
        key, k1, k2, k3, k4 = jax.random.split(key, 5)
        w_ih = jax.random.uniform(k1, (d_in, 3 * hidden_size), jnp.float32, -bound, bound)
        b_ih = jax.random.uniform(k2, (1, 3 * hidden_size), jnp.float32, -bound, bound)
        w_hh = jax.random.uniform(k3, (hidden_size, 3 * hidden_size), jnp.float32, -bound, bound)
        b_hh = jax.random.uniform(k4, (1, 3 * hidden_size), jnp.float32, -bound, bound)
        params.append((w_ih, b_ih, w_hh, b_hh))
    return params, key


# ----------------------------------------------------------------------------
# Pure-JAX reference (silent correctness check)
# ----------------------------------------------------------------------------
def gru_forward_ref(x, params, k):
    h_seq = jnp.transpose(x, (1, 0, 2)).astype(jnp.float32)       # (seq, B, D)
    for (w_ih, b_ih, w_hh, b_hh) in params:
        H = w_hh.shape[0]
        B = h_seq.shape[1]
        h0 = jnp.zeros((B, H), jnp.float32)

        def step(h_prev, x_t):
            gi = x_t @ w_ih + b_ih                                # (B, 3H)
            gh = h_prev @ w_hh + b_hh                             # (B, 3H)
            r = jax.nn.sigmoid(gi[:, :H] + gh[:, :H])
            z = jax.nn.sigmoid(gi[:, H:2 * H] + gh[:, H:2 * H])
            n = jnp.tanh(gi[:, 2 * H:] + r * gh[:, 2 * H:])
            h_new = (1.0 - z) * n + z * h_prev
            return h_new, h_new

        _, h_seq = jax.lax.scan(step, h0, h_seq)
    s = jnp.sum(h_seq, axis=-1)                                   # (seq, B)
    return jnp.abs(jnp.transpose(s)[:, :, None] * k[0, 0])


# ----------------------------------------------------------------------------
if __name__ == "__main__":
    # Module hyperparameters (small shapes consistent with the module)
    input_size, num_layers, dropout, hidden_size, output_size = 4, 2, 0.0, 32, 1
    batch, seq = 2, 8

    key = jax.random.PRNGKey(0)
    params, key = init_gru_params(key, input_size, hidden_size, num_layers)
    key, kk, kx = jax.random.split(key, 3)
    k_param = jax.random.normal(kk, (1, 1), jnp.float32)          # self.k
    x = jax.random.normal(kx, (batch, seq, input_size), jnp.float32)

    out = gru_forward(x, params, k_param)
    out = jax.block_until_ready(out)

    assert out.shape == (batch, seq, 1), out.shape

    ref = gru_forward_ref(x, params, k_param)
    assert jnp.allclose(out, ref, atol=5e-5, rtol=1e-5), (
        float(jnp.max(jnp.abs(out - ref))))

    print("KERNEL_OK")
</pallas_src>

<mosaic_0001>
module attributes {stable_mosaic.version = 11 : i64} {
  func.func @gru_fused_kernel(%arg0: memref<8x2x96xf32, #tpu.memory_space<vmem>>, %arg1: memref<1x1xf32, #tpu.memory_space<smem>>, %arg2: memref<32x96xf32, #tpu.memory_space<vmem>>, %arg3: memref<1x96xf32, #tpu.memory_space<vmem>>, %arg4: memref<32x96xf32, #tpu.memory_space<vmem>>, %arg5: memref<1x96xf32, #tpu.memory_space<vmem>>, %arg6: memref<32x96xf32, #tpu.memory_space<vmem>>, %arg7: memref<1x96xf32, #tpu.memory_space<vmem>>, %arg8: memref<2x8xf32, #tpu.memory_space<vmem>>) attributes {dimension_semantics = [], scalar_prefetch = 0 : i64, scratch_operands = 0 : i64, tpu.core_type = #tpu.core_type<tc>} {
    %c0 = arith.constant 0 : index
    %c0_0 = arith.constant 0 : index
    %0 = memref.load %arg1[%c0, %c0_0] : memref<1x1xf32, #tpu.memory_space<smem>>
    %c0_1 = arith.constant 0 : index
    %c0_2 = arith.constant 0 : index
    %1 = vector.load %arg2[%c0_1, %c0_2] : memref<32x96xf32, #tpu.memory_space<vmem>>, vector<32x96xf32>
    %c0_3 = arith.constant 0 : index
    %c0_4 = arith.constant 0 : index
    %2 = vector.load %arg3[%c0_3, %c0_4] : memref<1x96xf32, #tpu.memory_space<vmem>>, vector<1x96xf32>
    %cst = arith.constant 0.000000e+00 : f32
    %3 = vector.broadcast %cst : f32 to vector<2x32xf32>
    %cst_5 = arith.constant dense<0.000000e+00> : vector<2x96xf32>
    %4 = tpu.matmul %3, %1, %cst_5 {dimension_numbers = #tpu.dot_dimension_numbers<[1], [0], [0], [1], [0, 0, 1, 1], [], []>} : vector<2x32xf32>, vector<32x96xf32>, vector<2x96xf32> -> vector<2x96xf32>
    %5 = vector.broadcast %2 : vector<1x96xf32> to vector<2x96xf32>
    %6 = arith.addf %4, %5 : vector<2x96xf32>
    %c0_6 = arith.constant 0 : index
    %c0_7 = arith.constant 0 : index
    %c0_8 = arith.constant 0 : index
    %7 = vector.load %arg0[%c0_6, %c0_7, %c0_8] : memref<8x2x96xf32, #tpu.memory_space<vmem>>, vector<1x2x96xf32>
    %8 = vector.shape_cast %7 : vector<1x2x96xf32> to vector<2x96xf32>
    %9 = arith.addf %8, %6 : vector<2x96xf32>
    %10 = vector.extract_strided_slice %9 {offsets = [0, 0], sizes = [2, 32], strides = [1, 1]} : vector<2x96xf32> to vector<2x32xf32>
    %11 = arith.negf %10 : vector<2x32xf32>
    %12 = math.exp %11 : vector<2x32xf32>
    %cst_9 = arith.constant 1.000000e+00 : f32
    %13 = vector.broadcast %cst_9 : f32 to vector<2x32xf32>
    %14 = arith.addf %13, %12 : vector<2x32xf32>
    %15 = arith.divf %13, %14 : vector<2x32xf32>
    %16 = vector.extract_strided_slice %9 {offsets = [0, 32], sizes = [2, 32], strides = [1, 1]} : vector<2x96xf32> to vector<2x32xf32>
    %17 = arith.negf %16 : vector<2x32xf32>
    %18 = math.exp %17 : vector<2x32xf32>
    %cst_10 = arith.constant 1.000000e+00 : f32
    %19 = vector.broadcast %cst_10 : f32 to vector<2x32xf32>
    %20 = arith.addf %19, %18 : vector<2x32xf32>
    %21 = arith.divf %19, %20 : vector<2x32xf32>
    %22 = vector.extract_strided_slice %8 {offsets = [0, 64], sizes = [2, 32], strides = [1, 1]} : vector<2x96xf32> to vector<2x32xf32>
    %23 = vector.extract_strided_slice %6 {offsets = [0, 64], sizes = [2, 32], strides = [1, 1]} : vector<2x96xf32> to vector<2x32xf32>
    %24 = arith.mulf %15, %23 : vector<2x32xf32>
    %25 = arith.addf %22, %24 : vector<2x32xf32>
    %26 = math.tanh %25 : vector<2x32xf32>
    %27 = arith.subf %3, %26 : vector<2x32xf32>
    %28 = arith.mulf %21, %27 : vector<2x32xf32>
    %29 = arith.addf %26, %28 : vector<2x32xf32>
    %cst_11 = arith.constant dense<0.000000e+00> : vector<2x96xf32>
    %30 = tpu.matmul %29, %1, %cst_11 {dimension_numbers = #tpu.dot_dimension_numbers<[1], [0], [0], [1], [0, 0, 1, 1], [], []>} : vector<2x32xf32>, vector<32x96xf32>, vector<2x96xf32> -> vector<2x96xf32>
    %31 = vector.broadcast %2 : vector<1x96xf32> to vector<2x96xf32>
    %32 = arith.addf %30, %31 : vector<2x96xf32>
    %c1 = arith.constant 1 : index
    %c0_12 = arith.constant 0 : index
    %c0_13 = arith.constant 0 : index
    %33 = vector.load %arg0[%c1, %c0_12, %c0_13] : memref<8x2x96xf32, #tpu.memory_space<vmem>>, vector<1x2x96xf32>
    %34 = vector.shape_cast %33 : vector<1x2x96xf32> to vector<2x96xf32>
    %35 = arith.addf %34, %32 : vector<2x96xf32>
    %36 = vector.extract_strided_slice %35 {offsets = [0, 0], sizes = [2, 32], strides = [1, 1]} : vector<2x96xf32> to vector<2x32xf32>
    %37 = arith.negf %36 : vector<2x32xf32>
    %38 = math.exp %37 : vector<2x32xf32>
    %cst_14 = arith.constant 1.000000e+00 : f32
    %39 = vector.broadcast %cst_14 : f32 to vector<2x32xf32>
    %40 = arith.addf %39, %38 : vector<2x32xf32>
    %41 = arith.divf %39, %40 : vector<2x32xf32>
    %42 = vector.extract_strided_slice %35 {offsets = [0, 32], sizes = [2, 32], strides = [1, 1]} : vector<2x96xf32> to vector<2x32xf32>
    %43 = arith.negf %42 : vector<2x32xf32>
    %44 = math.exp %43 : vector<2x32xf32>
    %cst_15 = arith.constant 1.000000e+00 : f32
    %45 = vector.broadcast %cst_15 : f32 to vector<2x32xf32>
    %46 = arith.addf %45, %44 : vector<2x32xf32>
    %47 = arith.divf %45, %46 : vector<2x32xf32>
    %48 = vector.extract_strided_slice %34 {offsets = [0, 64], sizes = [2, 32], strides = [1, 1]} : vector<2x96xf32> to vector<2x32xf32>
    %49 = vector.extract_strided_slice %32 {offsets = [0, 64], sizes = [2, 32], strides = [1, 1]} : vector<2x96xf32> to vector<2x32xf32>
    %50 = arith.mulf %41, %49 : vector<2x32xf32>
    %51 = arith.addf %48, %50 : vector<2x32xf32>
    %52 = math.tanh %51 : vector<2x32xf32>
    %53 = arith.subf %29, %52 : vector<2x32xf32>
    %54 = arith.mulf %47, %53 : vector<2x32xf32>
    %55 = arith.addf %52, %54 : vector<2x32xf32>
    %cst_16 = arith.constant dense<0.000000e+00> : vector<2x96xf32>
    %56 = tpu.matmul %55, %1, %cst_16 {dimension_numbers = #tpu.dot_dimension_numbers<[1], [0], [0], [1], [0, 0, 1, 1], [], []>} : vector<2x32xf32>, vector<32x96xf32>, vector<2x96xf32> -> vector<2x96xf32>
    %57 = vector.broadcast %2 : vector<1x96xf32> to vector<2x96xf32>
    %58 = arith.addf %56, %57 : vector<2x96xf32>
    %c2 = arith.constant 2 : index
    %c0_17 = arith.constant 0 : index
    %c0_18 = arith.constant 0 : index
    %59 = vector.load %arg0[%c2, %c0_17, %c0_18] : memref<8x2x96xf32, #tpu.memory_space<vmem>>, vector<1x2x96xf32>
    %60 = vector.shape_cast %59 : vector<1x2x96xf32> to vector<2x96xf32>
    %61 = arith.addf %60, %58 : vector<2x96xf32>
    %62 = vector.extract_strided_slice %61 {offsets = [0, 0], sizes = [2, 32], strides = [1, 1]} : vector<2x96xf32> to vector<2x32xf32>
    %63 = arith.negf %62 : vector<2x32xf32>
    %64 = math.exp %63 : vector<2x32xf32>
    %cst_19 = arith.constant 1.000000e+00 : f32
    %65 = vector.broadcast %cst_19 : f32 to vector<2x32xf32>
    %66 = arith.addf %65, %64 : vector<2x32xf32>
    %67 = arith.divf %65, %66 : vector<2x32xf32>
    %68 = vector.extract_strided_slice %61 {offsets = [0, 32], sizes = [2, 32], strides = [1, 1]} : vector<2x96xf32> to vector<2x32xf32>
    %69 = arith.negf %68 : vector<2x32xf32>
    %70 = math.exp %69 : vector<2x32xf32>
    %cst_20 = arith.constant 1.000000e+00 : f32
    %71 = vector.broadcast %cst_20 : f32 to vector<2x32xf32>
    %72 = arith.addf %71, %70 : vector<2x32xf32>
    %73 = arith.divf %71, %72 : vector<2x32xf32>
    %74 = vector.extract_strided_slice %60 {offsets = [0, 64], sizes = [2, 32], strides = [1, 1]} : vector<2x96xf32> to vector<2x32xf32>
    %75 = vector.extract_strided_slice %58 {offsets = [0, 64], sizes = [2, 32], strides = [1, 1]} : vector<2x96xf32> to vector<2x32xf32>
    %76 = arith.mulf %67, %75 : vector<2x32xf32>
    %77 = arith.addf %74, %76 : vector<2x32xf32>
    %78 = math.tanh %77 : vector<2x32xf32>
    %79 = arith.subf %55, %78 : vector<2x32xf32>
    %80 = arith.mulf %73, %79 : vector<2x32xf32>
    %81 = arith.addf %78, %80 : vector<2x32xf32>
    %cst_21 = arith.constant dense<0.000000e+00> : vector<2x96xf32>
    %82 = tpu.matmul %81, %1, %cst_21 {dimension_numbers = #tpu.dot_dimension_numbers<[1], [0], [0], [1], [0, 0, 1, 1], [], []>} : vector<2x32xf32>, vector<32x96xf32>, vector<2x96xf32> -> vector<2x96xf32>
    %83 = vector.broadcast %2 : vector<1x96xf32> to vector<2x96xf32>
    %84 = arith.addf %82, %83 : vector<2x96xf32>
    %c3 = arith.constant 3 : index
    %c0_22 = arith.constant 0 : index
    %c0_23 = arith.constant 0 : index
    %85 = vector.load %arg0[%c3, %c0_22, %c0_23] : memref<8x2x96xf32, #tpu.memory_space<vmem>>, vector<1x2x96xf32>
    %86 = vector.shape_cast %85 : vector<1x2x96xf32> to vector<2x96xf32>
    %87 = arith.addf %86, %84 : vector<2x96xf32>
    %88 = vector.extract_strided_slice %87 {offsets = [0, 0], sizes = [2, 32], strides = [1, 1]} : vector<2x96xf32> to vector<2x32xf32>
    %89 = arith.negf %88 : vector<2x32xf32>
    %90 = math.exp %89 : vector<2x32xf32>
    %cst_24 = arith.constant 1.000000e+00 : f32
    %91 = vector.broadcast %cst_24 : f32 to vector<2x32xf32>
    %92 = arith.addf %91, %90 : vector<2x32xf32>
    %93 = arith.divf %91, %92 : vector<2x32xf32>
    %94 = vector.extract_strided_slice %87 {offsets = [0, 32], sizes = [2, 32], strides = [1, 1]} : vector<2x96xf32> to vector<2x32xf32>
    %95 = arith.negf %94 : vector<2x32xf32>
    %96 = math.exp %95 : vector<2x32xf32>
    %cst_25 = arith.constant 1.000000e+00 : f32
    %97 = vector.broadcast %cst_25 : f32 to vector<2x32xf32>
    %98 = arith.addf %97, %96 : vector<2x32xf32>
    %99 = arith.divf %97, %98 : vector<2x32xf32>
    %100 = vector.extract_strided_slice %86 {offsets = [0, 64], sizes = [2, 32], strides = [1, 1]} : vector<2x96xf32> to vector<2x32xf32>
    %101 = vector.extract_strided_slice %84 {offsets = [0, 64], sizes = [2, 32], strides = [1, 1]} : vector<2x96xf32> to vector<2x32xf32>
    %102 = arith.mulf %93, %101 : vector<2x32xf32>
    %103 = arith.addf %100, %102 : vector<2x32xf32>
    %104 = math.tanh %103 : vector<2x32xf32>
    %105 = arith.subf %81, %104 : vector<2x32xf32>
    %106 = arith.mulf %99, %105 : vector<2x32xf32>
    %107 = arith.addf %104, %106 : vector<2x32xf32>
    %cst_26 = arith.constant dense<0.000000e+00> : vector<2x96xf32>
    %108 = tpu.matmul %107, %1, %cst_26 {dimension_numbers = #tpu.dot_dimension_numbers<[1], [0], [0], [1], [0, 0, 1, 1], [], []>} : vector<2x32xf32>, vector<32x96xf32>, vector<2x96xf32> -> vector<2x96xf32>
    %109 = vector.broadcast %2 : vector<1x96xf32> to vector<2x96xf32>
    %110 = arith.addf %108, %109 : vector<2x96xf32>
    %c4 = arith.constant 4 : index
    %c0_27 = arith.constant 0 : index
    %c0_28 = arith.constant 0 : index
    %111 = vector.load %arg0[%c4, %c0_27, %c0_28] : memref<8x2x96xf32, #tpu.memory_space<vmem>>, vector<1x2x96xf32>
    %112 = vector.shape_cast %111 : vector<1x2x96xf32> to vector<2x96xf32>
    %113 = arith.addf %112, %110 : vector<2x96xf32>
    %114 = vector.extract_strided_slice %113 {offsets = [0, 0], sizes = [2, 32], strides = [1, 1]} : vector<2x96xf32> to vector<2x32xf32>
    %115 = arith.negf %114 : vector<2x32xf32>
    %116 = math.exp %115 : vector<2x32xf32>
    %cst_29 = arith.constant 1.000000e+00 : f32
    %117 = vector.broadcast %cst_29 : f32 to vector<2x32xf32>
    %118 = arith.addf %117, %116 : vector<2x32xf32>
    %119 = arith.divf %117, %118 : vector<2x32xf32>
    %120 = vector.extract_strided_slice %113 {offsets = [0, 32], sizes = [2, 32], strides = [1, 1]} : vector<2x96xf32> to vector<2x32xf32>
    %121 = arith.negf %120 : vector<2x32xf32>
    %122 = math.exp %121 : vector<2x32xf32>
    %cst_30 = arith.constant 1.000000e+00 : f32
    %123 = vector.broadcast %cst_30 : f32 to vector<2x32xf32>
    %124 = arith.addf %123, %122 : vector<2x32xf32>
    %125 = arith.divf %123, %124 : vector<2x32xf32>
    %126 = vector.extract_strided_slice %112 {offsets = [0, 64], sizes = [2, 32], strides = [1, 1]} : vector<2x96xf32> to vector<2x32xf32>
    %127 = vector.extract_strided_slice %110 {offsets = [0, 64], sizes = [2, 32], strides = [1, 1]} : vector<2x96xf32> to vector<2x32xf32>
    %128 = arith.mulf %119, %127 : vector<2x32xf32>
    %129 = arith.addf %126, %128 : vector<2x32xf32>
    %130 = math.tanh %129 : vector<2x32xf32>
    %131 = arith.subf %107, %130 : vector<2x32xf32>
    %132 = arith.mulf %125, %131 : vector<2x32xf32>
    %133 = arith.addf %130, %132 : vector<2x32xf32>
    %cst_31 = arith.constant dense<0.000000e+00> : vector<2x96xf32>
    %134 = tpu.matmul %133, %1, %cst_31 {dimension_numbers = #tpu.dot_dimension_numbers<[1], [0], [0], [1], [0, 0, 1, 1], [], []>} : vector<2x32xf32>, vector<32x96xf32>, vector<2x96xf32> -> vector<2x96xf32>
    %135 = vector.broadcast %2 : vector<1x96xf32> to vector<2x96xf32>
    %136 = arith.addf %134, %135 : vector<2x96xf32>
    %c5 = arith.constant 5 : index
    %c0_32 = arith.constant 0 : index
    %c0_33 = arith.constant 0 : index
    %137 = vector.load %arg0[%c5, %c0_32, %c0_33] : memref<8x2x96xf32, #tpu.memory_space<vmem>>, vector<1x2x96xf32>
    %138 = vector.shape_cast %137 : vector<1x2x96xf32> to vector<2x96xf32>
    %139 = arith.addf %138, %136 : vector<2x96xf32>
    %140 = vector.extract_strided_slice %139 {offsets = [0, 0], sizes = [2, 32], strides = [1, 1]} : vector<2x96xf32> to vector<2x32xf32>
    %141 = arith.negf %140 : vector<2x32xf32>
    %142 = math.exp %141 : vector<2x32xf32>
    %cst_34 = arith.constant 1.000000e+00 : f32
    %143 = vector.broadcast %cst_34 : f32 to vector<2x32xf32>
    %144 = arith.addf %143, %142 : vector<2x32xf32>
    %145 = arith.divf %143, %144 : vector<2x32xf32>
    %146 = vector.extract_strided_slice %139 {offsets = [0, 32], sizes = [2, 32], strides = [1, 1]} : vector<2x96xf32> to vector<2x32xf32>
    %147 = arith.negf %146 : vector<2x32xf32>
    %148 = math.exp %147 : vector<2x32xf32>
    %cst_35 = arith.constant 1.000000e+00 : f32
    %149 = vector.broadcast %cst_35 : f32 to vector<2x32xf32>
    %150 = arith.addf %149, %148 : vector<2x32xf32>
    %151 = arith.divf %149, %150 : vector<2x32xf32>
    %152 = vector.extract_strided_slice %138 {offsets = [0, 64], sizes = [2, 32], strides = [1, 1]} : vector<2x96xf32> to vector<2x32xf32>
    %153 = vector.extract_strided_slice %136 {offsets = [0, 64], sizes = [2, 32], strides = [1, 1]} : vector<2x96xf32> to vector<2x32xf32>
    %154 = arith.mulf %145, %153 : vector<2x32xf32>
    %155 = arith.addf %152, %154 : vector<2x32xf32>
    %156 = math.tanh %155 : vector<2x32xf32>
    %157 = arith.subf %133, %156 : vector<2x32xf32>
    %158 = arith.mulf %151, %157 : vector<2x32xf32>
    %159 = arith.addf %156, %158 : vector<2x32xf32>
    %cst_36 = arith.constant dense<0.000000e+00> : vector<2x96xf32>
    %160 = tpu.matmul %159, %1, %cst_36 {dimension_numbers = #tpu.dot_dimension_numbers<[1], [0], [0], [1], [0, 0, 1, 1], [], []>} : vector<2x32xf32>, vector<32x96xf32>, vector<2x96xf32> -> vector<2x96xf32>
    %161 = vector.broadcast %2 : vector<1x96xf32> to vector<2x96xf32>
    %162 = arith.addf %160, %161 : vector<2x96xf32>
    %c6 = arith.constant 6 : index
    %c0_37 = arith.constant 0 : index
    %c0_38 = arith.constant 0 : index
    %163 = vector.load %arg0[%c6, %c0_37, %c0_38] : memref<8x2x96xf32, #tpu.memory_space<vmem>>, vector<1x2x96xf32>
    %164 = vector.shape_cast %163 : vector<1x2x96xf32> to vector<2x96xf32>
    %165 = arith.addf %164, %162 : vector<2x96xf32>
    %166 = vector.extract_strided_slice %165 {offsets = [0, 0], sizes = [2, 32], strides = [1, 1]} : vector<2x96xf32> to vector<2x32xf32>
    %167 = arith.negf %166 : vector<2x32xf32>
    %168 = math.exp %167 : vector<2x32xf32>
    %cst_39 = arith.constant 1.000000e+00 : f32
    %169 = vector.broadcast %cst_39 : f32 to vector<2x32xf32>
    %170 = arith.addf %169, %168 : vector<2x32xf32>
    %171 = arith.divf %169, %170 : vector<2x32xf32>
    %172 = vector.extract_strided_slice %165 {offsets = [0, 32], sizes = [2, 32], strides = [1, 1]} : vector<2x96xf32> to vector<2x32xf32>
    %173 = arith.negf %172 : vector<2x32xf32>
    %174 = math.exp %173 : vector<2x32xf32>
    %cst_40 = arith.constant 1.000000e+00 : f32
    %175 = vector.broadcast %cst_40 : f32 to vector<2x32xf32>
    %176 = arith.addf %175, %174 : vector<2x32xf32>
    %177 = arith.divf %175, %176 : vector<2x32xf32>
    %178 = vector.extract_strided_slice %164 {offsets = [0, 64], sizes = [2, 32], strides = [1, 1]} : vector<2x96xf32> to vector<2x32xf32>
    %179 = vector.extract_strided_slice %162 {offsets = [0, 64], sizes = [2, 32], strides = [1, 1]} : vector<2x96xf32> to vector<2x32xf32>
    %180 = arith.mulf %171, %179 : vector<2x32xf32>
    %181 = arith.addf %178, %180 : vector<2x32xf32>
    %182 = math.tanh %181 : vector<2x32xf32>
    %183 = arith.subf %159, %182 : vector<2x32xf32>
    %184 = arith.mulf %177, %183 : vector<2x32xf32>
    %185 = arith.addf %182, %184 : vector<2x32xf32>
    %cst_41 = arith.constant dense<0.000000e+00> : vector<2x96xf32>
    %186 = tpu.matmul %185, %1, %cst_41 {dimension_numbers = #tpu.dot_dimension_numbers<[1], [0], [0], [1], [0, 0, 1, 1], [], []>} : vector<2x32xf32>, vector<32x96xf32>, vector<2x96xf32> -> vector<2x96xf32>
    %187 = vector.broadcast %2 : vector<1x96xf32> to vector<2x96xf32>
    %188 = arith.addf %186, %187 : vector<2x96xf32>
    %c7 = arith.constant 7 : index
    %c0_42 = arith.constant 0 : index
    %c0_43 = arith.constant 0 : index
    %189 = vector.load %arg0[%c7, %c0_42, %c0_43] : memref<8x2x96xf32, #tpu.memory_space<vmem>>, vector<1x2x96xf32>
    %190 = vector.shape_cast %189 : vector<1x2x96xf32> to vector<2x96xf32>
    %191 = arith.addf %190, %188 : vector<2x96xf32>
    %192 = vector.extract_strided_slice %191 {offsets = [0, 0], sizes = [2, 32], strides = [1, 1]} : vector<2x96xf32> to vector<2x32xf32>
    %193 = arith.negf %192 : vector<2x32xf32>
    %194 = math.exp %193 : vector<2x32xf32>
    %cst_44 = arith.constant 1.000000e+00 : f32
    %195 = vector.broadcast %cst_44 : f32 to vector<2x32xf32>
    %196 = arith.addf %195, %194 : vector<2x32xf32>
    %197 = arith.divf %195, %196 : vector<2x32xf32>
    %198 = vector.extract_strided_slice %191 {offsets = [0, 32], sizes = [2, 32], strides = [1, 1]} : vector<2x96xf32> to vector<2x32xf32>
    %199 = arith.negf %198 : vector<2x32xf32>
    %200 = math.exp %199 : vector<2x32xf32>
    %cst_45 = arith.constant 1.000000e+00 : f32
    %201 = vector.broadcast %cst_45 : f32 to vector<2x32xf32>
    %202 = arith.addf %201, %200 : vector<2x32xf32>
    %203 = arith.divf %201, %202 : vector<2x32xf32>
    %204 = vector.extract_strided_slice %190 {offsets = [0, 64], sizes = [2, 32], strides = [1, 1]} : vector<2x96xf32> to vector<2x32xf32>
    %205 = vector.extract_strided_slice %188 {offsets = [0, 64], sizes = [2, 32], strides = [1, 1]} : vector<2x96xf32> to vector<2x32xf32>
    %206 = arith.mulf %197, %205 : vector<2x32xf32>
    %207 = arith.addf %204, %206 : vector<2x32xf32>
    %208 = math.tanh %207 : vector<2x32xf32>
    %209 = arith.subf %185, %208 : vector<2x32xf32>
    %210 = arith.mulf %203, %209 : vector<2x32xf32>
    %211 = arith.addf %208, %210 : vector<2x32xf32>
    %c0_46 = arith.constant 0 : index
    %c0_47 = arith.constant 0 : index
    %212 = vector.load %arg4[%c0_46, %c0_47] : memref<32x96xf32, #tpu.memory_space<vmem>>, vector<32x96xf32>
    %c0_48 = arith.constant 0 : index
    %c0_49 = arith.constant 0 : index
    %213 = vector.load %arg5[%c0_48, %c0_49] : memref<1x96xf32, #tpu.memory_space<vmem>>, vector<1x96xf32>
    %c0_50 = arith.constant 0 : index
    %c0_51 = arith.constant 0 : index
    %214 = vector.load %arg6[%c0_50, %c0_51] : memref<32x96xf32, #tpu.memory_space<vmem>>, vector<32x96xf32>
    %c0_52 = arith.constant 0 : index
    %c0_53 = arith.constant 0 : index
    %215 = vector.load %arg7[%c0_52, %c0_53] : memref<1x96xf32, #tpu.memory_space<vmem>>, vector<1x96xf32>
    %cst_54 = arith.constant dense<0.000000e+00> : vector<2x96xf32>
    %216 = tpu.matmul %29, %212, %cst_54 {dimension_numbers = #tpu.dot_dimension_numbers<[1], [0], [0], [1], [0, 0, 1, 1], [], []>} : vector<2x32xf32>, vector<32x96xf32>, vector<2x96xf32> -> vector<2x96xf32>
    %217 = vector.broadcast %213 : vector<1x96xf32> to vector<2x96xf32>
    %218 = arith.addf %216, %217 : vector<2x96xf32>
    %cst_55 = arith.constant dense<0.000000e+00> : vector<2x96xf32>
    %219 = tpu.matmul %55, %212, %cst_55 {dimension_numbers = #tpu.dot_dimension_numbers<[1], [0], [0], [1], [0, 0, 1, 1], [], []>} : vector<2x32xf32>, vector<32x96xf32>, vector<2x96xf32> -> vector<2x96xf32>
    %220 = vector.broadcast %213 : vector<1x96xf32> to vector<2x96xf32>
    %221 = arith.addf %219, %220 : vector<2x96xf32>
    %cst_56 = arith.constant dense<0.000000e+00> : vector<2x96xf32>
    %222 = tpu.matmul %81, %212, %cst_56 {dimension_numbers = #tpu.dot_dimension_numbers<[1], [0], [0], [1], [0, 0, 1, 1], [], []>} : vector<2x32xf32>, vector<32x96xf32>, vector<2x96xf32> -> vector<2x96xf32>
    %223 = vector.broadcast %213 : vector<1x96xf32> to vector<2x96xf32>
    %224 = arith.addf %222, %223 : vector<2x96xf32>
    %cst_57 = arith.constant dense<0.000000e+00> : vector<2x96xf32>
    %225 = tpu.matmul %107, %212, %cst_57 {dimension_numbers = #tpu.dot_dimension_numbers<[1], [0], [0], [1], [0, 0, 1, 1], [], []>} : vector<2x32xf32>, vector<32x96xf32>, vector<2x96xf32> -> vector<2x96xf32>
    %226 = vector.broadcast %213 : vector<1x96xf32> to vector<2x96xf32>
    %227 = arith.addf %225, %226 : vector<2x96xf32>
    %cst_58 = arith.constant dense<0.000000e+00> : vector<2x96xf32>
    %228 = tpu.matmul %133, %212, %cst_58 {dimension_numbers = #tpu.dot_dimension_numbers<[1], [0], [0], [1], [0, 0, 1, 1], [], []>} : vector<2x32xf32>, vector<32x96xf32>, vector<2x96xf32> -> vector<2x96xf32>
    %229 = vector.broadcast %213 : vector<1x96xf32> to vector<2x96xf32>
    %230 = arith.addf %228, %229 : vector<2x96xf32>
    %cst_59 = arith.constant dense<0.000000e+00> : vector<2x96xf32>
    %231 = tpu.matmul %159, %212, %cst_59 {dimension_numbers = #tpu.dot_dimension_numbers<[1], [0], [0], [1], [0, 0, 1, 1], [], []>} : vector<2x32xf32>, vector<32x96xf32>, vector<2x96xf32> -> vector<2x96xf32>
    %232 = vector.broadcast %213 : vector<1x96xf32> to vector<2x96xf32>
    %233 = arith.addf %231, %232 : vector<2x96xf32>
    %cst_60 = arith.constant dense<0.000000e+00> : vector<2x96xf32>
    %234 = tpu.matmul %185, %212, %cst_60 {dimension_numbers = #tpu.dot_dimension_numbers<[1], [0], [0], [1], [0, 0, 1, 1], [], []>} : vector<2x32xf32>, vector<32x96xf32>, vector<2x96xf32> -> vector<2x96xf32>
    %235 = vector.broadcast %213 : vector<1x96xf32> to vector<2x96xf32>
    %236 = arith.addf %234, %235 : vector<2x96xf32>
    %cst_61 = arith.constant dense<0.000000e+00> : vector<2x96xf32>
    %237 = tpu.matmul %211, %212, %cst_61 {dimension_numbers = #tpu.dot_dimension_numbers<[1], [0], [0], [1], [0, 0, 1, 1], [], []>} : vector<2x32xf32>, vector<32x96xf32>, vector<2x96xf32> -> vector<2x96xf32>
    %238 = vector.broadcast %213 : vector<1x96xf32> to vector<2x96xf32>
    %239 = arith.addf %237, %238 : vector<2x96xf32>
    %cst_62 = arith.constant 0.000000e+00 : f32
    %240 = vector.broadcast %cst_62 : f32 to vector<2x32xf32>
    %cst_63 = arith.constant dense<0.000000e+00> : vector<2x96xf32>
    %241 = tpu.matmul %240, %214, %cst_63 {dimension_numbers = #tpu.dot_dimension_numbers<[1], [0], [0], [1], [0, 0, 1, 1], [], []>} : vector<2x32xf32>, vector<32x96xf32>, vector<2x96xf32> -> vector<2x96xf32>
    %242 = vector.broadcast %215 : vector<1x96xf32> to vector<2x96xf32>
    %243 = arith.addf %241, %242 : vector<2x96xf32>
    %244 = arith.addf %218, %243 : vector<2x96xf32>
    %245 = vector.extract_strided_slice %244 {offsets = [0, 0], sizes = [2, 32], strides = [1, 1]} : vector<2x96xf32> to vector<2x32xf32>
    %246 = arith.negf %245 : vector<2x32xf32>
    %247 = math.exp %246 : vector<2x32xf32>
    %cst_64 = arith.constant 1.000000e+00 : f32
    %248 = vector.broadcast %cst_64 : f32 to vector<2x32xf32>
    %249 = arith.addf %248, %247 : vector<2x32xf32>
    %250 = arith.divf %248, %249 : vector<2x32xf32>
    %251 = vector.extract_strided_slice %244 {offsets = [0, 32], sizes = [2, 32], strides = [1, 1]} : vector<2x96xf32> to vector<2x32xf32>
    %252 = arith.negf %251 : vector<2x32xf32>
    %253 = math.exp %252 : vector<2x32xf32>
    %cst_65 = arith.constant 1.000000e+00 : f32
    %254 = vector.broadcast %cst_65 : f32 to vector<2x32xf32>
    %255 = arith.addf %254, %253 : vector<2x32xf32>
    %256 = arith.divf %254, %255 : vector<2x32xf32>
    %257 = vector.extract_strided_slice %218 {offsets = [0, 64], sizes = [2, 32], strides = [1, 1]} : vector<2x96xf32> to vector<2x32xf32>
    %258 = vector.extract_strided_slice %243 {offsets = [0, 64], sizes = [2, 32], strides = [1, 1]} : vector<2x96xf32> to vector<2x32xf32>
    %259 = arith.mulf %250, %258 : vector<2x32xf32>
    %260 = arith.addf %257, %259 : vector<2x32xf32>
    %261 = math.tanh %260 : vector<2x32xf32>
    %262 = arith.subf %240, %261 : vector<2x32xf32>
    %263 = arith.mulf %256, %262 : vector<2x32xf32>
    %264 = arith.addf %261, %263 : vector<2x32xf32>
    %cst_66 = arith.constant dense<0.000000e+00> : vector<2x96xf32>
    %265 = tpu.matmul %264, %214, %cst_66 {dimension_numbers = #tpu.dot_dimension_numbers<[1], [0], [0], [1], [0, 0, 1, 1], [], []>} : vector<2x32xf32>, vector<32x96xf32>, vector<2x96xf32> -> vector<2x96xf32>
    %266 = vector.broadcast %215 : vector<1x96xf32> to vector<2x96xf32>
    %267 = arith.addf %265, %266 : vector<2x96xf32>
    %268 = arith.addf %221, %267 : vector<2x96xf32>
    %269 = vector.extract_strided_slice %268 {offsets = [0, 0], sizes = [2, 32], strides = [1, 1]} : vector<2x96xf32> to vector<2x32xf32>
    %270 = arith.negf %269 : vector<2x32xf32>
    %271 = math.exp %270 : vector<2x32xf32>
    %cst_67 = arith.constant 1.000000e+00 : f32
    %272 = vector.broadcast %cst_67 : f32 to vector<2x32xf32>
    %273 = arith.addf %272, %271 : vector<2x32xf32>
    %274 = arith.divf %272, %273 : vector<2x32xf32>
    %275 = vector.extract_strided_slice %268 {offsets = [0, 32], sizes = [2, 32], strides = [1, 1]} : vector<2x96xf32> to vector<2x32xf32>
    %276 = arith.negf %275 : vector<2x32xf32>
    %277 = math.exp %276 : vector<2x32xf32>
    %cst_68 = arith.constant 1.000000e+00 : f32
    %278 = vector.broadcast %cst_68 : f32 to vector<2x32xf32>
    %279 = arith.addf %278, %277 : vector<2x32xf32>
    %280 = arith.divf %278, %279 : vector<2x32xf32>
    %281 = vector.extract_strided_slice %221 {offsets = [0, 64], sizes = [2, 32], strides = [1, 1]} : vector<2x96xf32> to vector<2x32xf32>
    %282 = vector.extract_strided_slice %267 {offsets = [0, 64], sizes = [2, 32], strides = [1, 1]} : vector<2x96xf32> to vector<2x32xf32>
    %283 = arith.mulf %274, %282 : vector<2x32xf32>
    %284 = arith.addf %281, %283 : vector<2x32xf32>
    %285 = math.tanh %284 : vector<2x32xf32>
    %286 = arith.subf %264, %285 : vector<2x32xf32>
    %287 = arith.mulf %280, %286 : vector<2x32xf32>
    %288 = arith.addf %285, %287 : vector<2x32xf32>
    %cst_69 = arith.constant dense<0.000000e+00> : vector<2x96xf32>
    %289 = tpu.matmul %288, %214, %cst_69 {dimension_numbers = #tpu.dot_dimension_numbers<[1], [0], [0], [1], [0, 0, 1, 1], [], []>} : vector<2x32xf32>, vector<32x96xf32>, vector<2x96xf32> -> vector<2x96xf32>
    %290 = vector.broadcast %215 : vector<1x96xf32> to vector<2x96xf32>
    %291 = arith.addf %289, %290 : vector<2x96xf32>
    %292 = arith.addf %224, %291 : vector<2x96xf32>
    %293 = vector.extract_strided_slice %292 {offsets = [0, 0], sizes = [2, 32], strides = [1, 1]} : vector<2x96xf32> to vector<2x32xf32>
    %294 = arith.negf %293 : vector<2x32xf32>
    %295 = math.exp %294 : vector<2x32xf32>
    %cst_70 = arith.constant 1.000000e+00 : f32
    %296 = vector.broadcast %cst_70 : f32 to vector<2x32xf32>
    %297 = arith.addf %296, %295 : vector<2x32xf32>
    %298 = arith.divf %296, %297 : vector<2x32xf32>
    %299 = vector.extract_strided_slice %292 {offsets = [0, 32], sizes = [2, 32], strides = [1, 1]} : vector<2x96xf32> to vector<2x32xf32>
    %300 = arith.negf %299 : vector<2x32xf32>
    %301 = math.exp %300 : vector<2x32xf32>
    %cst_71 = arith.constant 1.000000e+00 : f32
    %302 = vector.broadcast %cst_71 : f32 to vector<2x32xf32>
    %303 = arith.addf %302, %301 : vector<2x32xf32>
    %304 = arith.divf %302, %303 : vector<2x32xf32>
    %305 = vector.extract_strided_slice %224 {offsets = [0, 64], sizes = [2, 32], strides = [1, 1]} : vector<2x96xf32> to vector<2x32xf32>
    %306 = vector.extract_strided_slice %291 {offsets = [0, 64], sizes = [2, 32], strides = [1, 1]} : vector<2x96xf32> to vector<2x32xf32>
    %307 = arith.mulf %298, %306 : vector<2x32xf32>
    %308 = arith.addf %305, %307 : vector<2x32xf32>
    %309 = math.tanh %308 : vector<2x32xf32>
    %310 = arith.subf %288, %309 : vector<2x32xf32>
    %311 = arith.mulf %304, %310 : vector<2x32xf32>
    %312 = arith.addf %309, %311 : vector<2x32xf32>
    %cst_72 = arith.constant dense<0.000000e+00> : vector<2x96xf32>
    %313 = tpu.matmul %312, %214, %cst_72 {dimension_numbers = #tpu.dot_dimension_numbers<[1], [0], [0], [1], [0, 0, 1, 1], [], []>} : vector<2x32xf32>, vector<32x96xf32>, vector<2x96xf32> -> vector<2x96xf32>
    %314 = vector.broadcast %215 : vector<1x96xf32> to vector<2x96xf32>
    %315 = arith.addf %313, %314 : vector<2x96xf32>
    %316 = arith.addf %227, %315 : vector<2x96xf32>
    %317 = vector.extract_strided_slice %316 {offsets = [0, 0], sizes = [2, 32], strides = [1, 1]} : vector<2x96xf32> to vector<2x32xf32>
    %318 = arith.negf %317 : vector<2x32xf32>
    %319 = math.exp %318 : vector<2x32xf32>
    %cst_73 = arith.constant 1.000000e+00 : f32
    %320 = vector.broadcast %cst_73 : f32 to vector<2x32xf32>
    %321 = arith.addf %320, %319 : vector<2x32xf32>
    %322 = arith.divf %320, %321 : vector<2x32xf32>
    %323 = vector.extract_strided_slice %316 {offsets = [0, 32], sizes = [2, 32], strides = [1, 1]} : vector<2x96xf32> to vector<2x32xf32>
    %324 = arith.negf %323 : vector<2x32xf32>
    %325 = math.exp %324 : vector<2x32xf32>
    %cst_74 = arith.constant 1.000000e+00 : f32
    %326 = vector.broadcast %cst_74 : f32 to vector<2x32xf32>
    %327 = arith.addf %326, %325 : vector<2x32xf32>
    %328 = arith.divf %326, %327 : vector<2x32xf32>
    %329 = vector.extract_strided_slice %227 {offsets = [0, 64], sizes = [2, 32], strides = [1, 1]} : vector<2x96xf32> to vector<2x32xf32>
    %330 = vector.extract_strided_slice %315 {offsets = [0, 64], sizes = [2, 32], strides = [1, 1]} : vector<2x96xf32> to vector<2x32xf32>
    %331 = arith.mulf %322, %330 : vector<2x32xf32>
    %332 = arith.addf %329, %331 : vector<2x32xf32>
    %333 = math.tanh %332 : vector<2x32xf32>
    %334 = arith.subf %312, %333 : vector<2x32xf32>
    %335 = arith.mulf %328, %334 : vector<2x32xf32>
    %336 = arith.addf %333, %335 : vector<2x32xf32>
    %cst_75 = arith.constant dense<0.000000e+00> : vector<2x96xf32>
    %337 = tpu.matmul %336, %214, %cst_75 {dimension_numbers = #tpu.dot_dimension_numbers<[1], [0], [0], [1], [0, 0, 1, 1], [], []>} : vector<2x32xf32>, vector<32x96xf32>, vector<2x96xf32> -> vector<2x96xf32>
    %338 = vector.broadcast %215 : vector<1x96xf32> to vector<2x96xf32>
    %339 = arith.addf %337, %338 : vector<2x96xf32>
    %340 = arith.addf %230, %339 : vector<2x96xf32>
    %341 = vector.extract_strided_slice %340 {offsets = [0, 0], sizes = [2, 32], strides = [1, 1]} : vector<2x96xf32> to vector<2x32xf32>
    %342 = arith.negf %341 : vector<2x32xf32>
    %343 = math.exp %342 : vector<2x32xf32>
    %cst_76 = arith.constant 1.000000e+00 : f32
    %344 = vector.broadcast %cst_76 : f32 to vector<2x32xf32>
    %345 = arith.addf %344, %343 : vector<2x32xf32>
    %346 = arith.divf %344, %345 : vector<2x32xf32>
    %347 = vector.extract_strided_slice %340 {offsets = [0, 32], sizes = [2, 32], strides = [1, 1]} : vector<2x96xf32> to vector<2x32xf32>
    %348 = arith.negf %347 : vector<2x32xf32>
    %349 = math.exp %348 : vector<2x32xf32>
    %cst_77 = arith.constant 1.000000e+00 : f32
    %350 = vector.broadcast %cst_77 : f32 to vector<2x32xf32>
    %351 = arith.addf %350, %349 : vector<2x32xf32>
    %352 = arith.divf %350, %351 : vector<2x32xf32>
    %353 = vector.extract_strided_slice %230 {offsets = [0, 64], sizes = [2, 32], strides = [1, 1]} : vector<2x96xf32> to vector<2x32xf32>
    %354 = vector.extract_strided_slice %339 {offsets = [0, 64], sizes = [2, 32], strides = [1, 1]} : vector<2x96xf32> to vector<2x32xf32>
    %355 = arith.mulf %346, %354 : vector<2x32xf32>
    %356 = arith.addf %353, %355 : vector<2x32xf32>
    %357 = math.tanh %356 : vector<2x32xf32>
    %358 = arith.subf %336, %357 : vector<2x32xf32>
    %359 = arith.mulf %352, %358 : vector<2x32xf32>
    %360 = arith.addf %357, %359 : vector<2x32xf32>
    %cst_78 = arith.constant dense<0.000000e+00> : vector<2x96xf32>
    %361 = tpu.matmul %360, %214, %cst_78 {dimension_numbers = #tpu.dot_dimension_numbers<[1], [0], [0], [1], [0, 0, 1, 1], [], []>} : vector<2x32xf32>, vector<32x96xf32>, vector<2x96xf32> -> vector<2x96xf32>
    %362 = vector.broadcast %215 : vector<1x96xf32> to vector<2x96xf32>
    %363 = arith.addf %361, %362 : vector<2x96xf32>
    %364 = arith.addf %233, %363 : vector<2x96xf32>
    %365 = vector.extract_strided_slice %364 {offsets = [0, 0], sizes = [2, 32], strides = [1, 1]} : vector<2x96xf32> to vector<2x32xf32>
    %366 = arith.negf %365 : vector<2x32xf32>
    %367 = math.exp %366 : vector<2x32xf32>
    %cst_79 = arith.constant 1.000000e+00 : f32
    %368 = vector.broadcast %cst_79 : f32 to vector<2x32xf32>
    %369 = arith.addf %368, %367 : vector<2x32xf32>
    %370 = arith.divf %368, %369 : vector<2x32xf32>
    %371 = vector.extract_strided_slice %364 {offsets = [0, 32], sizes = [2, 32], strides = [1, 1]} : vector<2x96xf32> to vector<2x32xf32>
    %372 = arith.negf %371 : vector<2x32xf32>
    %373 = math.exp %372 : vector<2x32xf32>
    %cst_80 = arith.constant 1.000000e+00 : f32
    %374 = vector.broadcast %cst_80 : f32 to vector<2x32xf32>
    %375 = arith.addf %374, %373 : vector<2x32xf32>
    %376 = arith.divf %374, %375 : vector<2x32xf32>
    %377 = vector.extract_strided_slice %233 {offsets = [0, 64], sizes = [2, 32], strides = [1, 1]} : vector<2x96xf32> to vector<2x32xf32>
    %378 = vector.extract_strided_slice %363 {offsets = [0, 64], sizes = [2, 32], strides = [1, 1]} : vector<2x96xf32> to vector<2x32xf32>
    %379 = arith.mulf %370, %378 : vector<2x32xf32>
    %380 = arith.addf %377, %379 : vector<2x32xf32>
    %381 = math.tanh %380 : vector<2x32xf32>
    %382 = arith.subf %360, %381 : vector<2x32xf32>
    %383 = arith.mulf %376, %382 : vector<2x32xf32>
    %384 = arith.addf %381, %383 : vector<2x32xf32>
    %cst_81 = arith.constant dense<0.000000e+00> : vector<2x96xf32>
    %385 = tpu.matmul %384, %214, %cst_81 {dimension_numbers = #tpu.dot_dimension_numbers<[1], [0], [0], [1], [0, 0, 1, 1], [], []>} : vector<2x32xf32>, vector<32x96xf32>, vector<2x96xf32> -> vector<2x96xf32>
    %386 = vector.broadcast %215 : vector<1x96xf32> to vector<2x96xf32>
    %387 = arith.addf %385, %386 : vector<2x96xf32>
    %388 = arith.addf %236, %387 : vector<2x96xf32>
    %389 = vector.extract_strided_slice %388 {offsets = [0, 0], sizes = [2, 32], strides = [1, 1]} : vector<2x96xf32> to vector<2x32xf32>
    %390 = arith.negf %389 : vector<2x32xf32>
    %391 = math.exp %390 : vector<2x32xf32>
    %cst_82 = arith.constant 1.000000e+00 : f32
    %392 = vector.broadcast %cst_82 : f32 to vector<2x32xf32>
    %393 = arith.addf %392, %391 : vector<2x32xf32>
    %394 = arith.divf %392, %393 : vector<2x32xf32>
    %395 = vector.extract_strided_slice %388 {offsets = [0, 32], sizes = [2, 32], strides = [1, 1]} : vector<2x96xf32> to vector<2x32xf32>
    %396 = arith.negf %395 : vector<2x32xf32>
    %397 = math.exp %396 : vector<2x32xf32>
    %cst_83 = arith.constant 1.000000e+00 : f32
    %398 = vector.broadcast %cst_83 : f32 to vector<2x32xf32>
    %399 = arith.addf %398, %397 : vector<2x32xf32>
    %400 = arith.divf %398, %399 : vector<2x32xf32>
    %401 = vector.extract_strided_slice %236 {offsets = [0, 64], sizes = [2, 32], strides = [1, 1]} : vector<2x96xf32> to vector<2x32xf32>
    %402 = vector.extract_strided_slice %387 {offsets = [0, 64], sizes = [2, 32], strides = [1, 1]} : vector<2x96xf32> to vector<2x32xf32>
    %403 = arith.mulf %394, %402 : vector<2x32xf32>
    %404 = arith.addf %401, %403 : vector<2x32xf32>
    %405 = math.tanh %404 : vector<2x32xf32>
    %406 = arith.subf %384, %405 : vector<2x32xf32>
    %407 = arith.mulf %400, %406 : vector<2x32xf32>
    %408 = arith.addf %405, %407 : vector<2x32xf32>
    %cst_84 = arith.constant dense<0.000000e+00> : vector<2x96xf32>
    %409 = tpu.matmul %408, %214, %cst_84 {dimension_numbers = #tpu.dot_dimension_numbers<[1], [0], [0], [1], [0, 0, 1, 1], [], []>} : vector<2x32xf32>, vector<32x96xf32>, vector<2x96xf32> -> vector<2x96xf32>
    %410 = vector.broadcast %215 : vector<1x96xf32> to vector<2x96xf32>
    %411 = arith.addf %409, %410 : vector<2x96xf32>
    %412 = arith.addf %239, %411 : vector<2x96xf32>
    %413 = vector.extract_strided_slice %412 {offsets = [0, 0], sizes = [2, 32], strides = [1, 1]} : vector<2x96xf32> to vector<2x32xf32>
    %414 = arith.negf %413 : vector<2x32xf32>
    %415 = math.exp %414 : vector<2x32xf32>
    %cst_85 = arith.constant 1.000000e+00 : f32
    %416 = vector.broadcast %cst_85 : f32 to vector<2x32xf32>
    %417 = arith.addf %416, %415 : vector<2x32xf32>
    %418 = arith.divf %416, %417 : vector<2x32xf32>
    %419 = vector.extract_strided_slice %412 {offsets = [0, 32], sizes = [2, 32], strides = [1, 1]} : vector<2x96xf32> to vector<2x32xf32>
    %420 = arith.negf %419 : vector<2x32xf32>
    %421 = math.exp %420 : vector<2x32xf32>
    %cst_86 = arith.constant 1.000000e+00 : f32
    %422 = vector.broadcast %cst_86 : f32 to vector<2x32xf32>
    %423 = arith.addf %422, %421 : vector<2x32xf32>
    %424 = arith.divf %422, %423 : vector<2x32xf32>
    %425 = vector.extract_strided_slice %239 {offsets = [0, 64], sizes = [2, 32], strides = [1, 1]} : vector<2x96xf32> to vector<2x32xf32>
    %426 = vector.extract_strided_slice %411 {offsets = [0, 64], sizes = [2, 32], strides = [1, 1]} : vector<2x96xf32> to vector<2x32xf32>
    %427 = arith.mulf %418, %426 : vector<2x32xf32>
    %428 = arith.addf %425, %427 : vector<2x32xf32>
    %429 = math.tanh %428 : vector<2x32xf32>
    %430 = arith.subf %408, %429 : vector<2x32xf32>
    %431 = arith.mulf %424, %430 : vector<2x32xf32>
    %432 = arith.addf %429, %431 : vector<2x32xf32>
    %cst_87 = arith.constant dense<0.000000e+00> : vector<2xf32>
    %433 = vector.multi_reduction <add>, %264, %cst_87 [1] : vector<2x32xf32> to vector<2xf32>
    %434 = vector.shape_cast %433 : vector<2xf32> to vector<2x1xf32>
    %435 = vector.broadcast %0 : f32 to vector<2x1xf32>
    %436 = arith.mulf %435, %434 : vector<2x1xf32>
    %437 = math.absf %436 : vector<2x1xf32>
    %c0_88 = arith.constant 0 : index
    %c0_89 = arith.constant 0 : index
    %438 = vector.load %arg8[%c0_88, %c0_89] : memref<2x8xf32, #tpu.memory_space<vmem>>, vector<2x1xf32>
    tpu.vector_store %arg8[%c0_88, %c0_89], %437 {strides = array<i32>} : memref<2x8xf32, #tpu.memory_space<vmem>>, vector<2x1xf32>,
    %cst_90 = arith.constant dense<0.000000e+00> : vector<2xf32>
    %439 = vector.multi_reduction <add>, %288, %cst_90 [1] : vector<2x32xf32> to vector<2xf32>
    %440 = vector.shape_cast %439 : vector<2xf32> to vector<2x1xf32>
    %441 = vector.broadcast %0 : f32 to vector<2x1xf32>
    %442 = arith.mulf %441, %440 : vector<2x1xf32>
    %443 = math.absf %442 : vector<2x1xf32>
    %c0_91 = arith.constant 0 : index
    %c1_92 = arith.constant 1 : index
    %444 = vector.load %arg8[%c0_91, %c1_92] : memref<2x8xf32, #tpu.memory_space<vmem>>, vector<2x1xf32>
    tpu.vector_store %arg8[%c0_91, %c1_92], %443 {strides = array<i32>} : memref<2x8xf32, #tpu.memory_space<vmem>>, vector<2x1xf32>,
    %cst_93 = arith.constant dense<0.000000e+00> : vector<2xf32>
    %445 = vector.multi_reduction <add>, %312, %cst_93 [1] : vector<2x32xf32> to vector<2xf32>
    %446 = vector.shape_cast %445 : vector<2xf32> to vector<2x1xf32>
    %447 = vector.broadcast %0 : f32 to vector<2x1xf32>
    %448 = arith.mulf %447, %446 : vector<2x1xf32>
    %449 = math.absf %448 : vector<2x1xf32>
    %c0_94 = arith.constant 0 : index
    %c2_95 = arith.constant 2 : index
    %450 = vector.load %arg8[%c0_94, %c2_95] : memref<2x8xf32, #tpu.memory_space<vmem>>, vector<2x1xf32>
    tpu.vector_store %arg8[%c0_94, %c2_95], %449 {strides = array<i32>} : memref<2x8xf32, #tpu.memory_space<vmem>>, vector<2x1xf32>,
    %cst_96 = arith.constant dense<0.000000e+00> : vector<2xf32>
    %451 = vector.multi_reduction <add>, %336, %cst_96 [1] : vector<2x32xf32> to vector<2xf32>
    %452 = vector.shape_cast %451 : vector<2xf32> to vector<2x1xf32>
    %453 = vector.broadcast %0 : f32 to vector<2x1xf32>
    %454 = arith.mulf %453, %452 : vector<2x1xf32>
    %455 = math.absf %454 : vector<2x1xf32>
    %c0_97 = arith.constant 0 : index
    %c3_98 = arith.constant 3 : index
    %456 = vector.load %arg8[%c0_97, %c3_98] : memref<2x8xf32, #tpu.memory_space<vmem>>, vector<2x1xf32>
    tpu.vector_store %arg8[%c0_97, %c3_98], %455 {strides = array<i32>} : memref<2x8xf32, #tpu.memory_space<vmem>>, vector<2x1xf32>,
    %cst_99 = arith.constant dense<0.000000e+00> : vector<2xf32>
    %457 = vector.multi_reduction <add>, %360, %cst_99 [1] : vector<2x32xf32> to vector<2xf32>
    %458 = vector.shape_cast %457 : vector<2xf32> to vector<2x1xf32>
    %459 = vector.broadcast %0 : f32 to vector<2x1xf32>
    %460 = arith.mulf %459, %458 : vector<2x1xf32>
    %461 = math.absf %460 : vector<2x1xf32>
    %c0_100 = arith.constant 0 : index
    %c4_101 = arith.constant 4 : index
    %462 = vector.load %arg8[%c0_100, %c4_101] : memref<2x8xf32, #tpu.memory_space<vmem>>, vector<2x1xf32>
    tpu.vector_store %arg8[%c0_100, %c4_101], %461 {strides = array<i32>} : memref<2x8xf32, #tpu.memory_space<vmem>>, vector<2x1xf32>,
    %cst_102 = arith.constant dense<0.000000e+00> : vector<2xf32>
    %463 = vector.multi_reduction <add>, %384, %cst_102 [1] : vector<2x32xf32> to vector<2xf32>
    %464 = vector.shape_cast %463 : vector<2xf32> to vector<2x1xf32>
    %465 = vector.broadcast %0 : f32 to vector<2x1xf32>
    %466 = arith.mulf %465, %464 : vector<2x1xf32>
    %467 = math.absf %466 : vector<2x1xf32>
    %c0_103 = arith.constant 0 : index
    %c5_104 = arith.constant 5 : index
    %468 = vector.load %arg8[%c0_103, %c5_104] : memref<2x8xf32, #tpu.memory_space<vmem>>, vector<2x1xf32>
    tpu.vector_store %arg8[%c0_103, %c5_104], %467 {strides = array<i32>} : memref<2x8xf32, #tpu.memory_space<vmem>>, vector<2x1xf32>,
    %cst_105 = arith.constant dense<0.000000e+00> : vector<2xf32>
    %469 = vector.multi_reduction <add>, %408, %cst_105 [1] : vector<2x32xf32> to vector<2xf32>
    %470 = vector.shape_cast %469 : vector<2xf32> to vector<2x1xf32>
    %471 = vector.broadcast %0 : f32 to vector<2x1xf32>
    %472 = arith.mulf %471, %470 : vector<2x1xf32>
    %473 = math.absf %472 : vector<2x1xf32>
    %c0_106 = arith.constant 0 : index
    %c6_107 = arith.constant 6 : index
    %474 = vector.load %arg8[%c0_106, %c6_107] : memref<2x8xf32, #tpu.memory_space<vmem>>, vector<2x1xf32>
    tpu.vector_store %arg8[%c0_106, %c6_107], %473 {strides = array<i32>} : memref<2x8xf32, #tpu.memory_space<vmem>>, vector<2x1xf32>,
    %cst_108 = arith.constant dense<0.000000e+00> : vector<2xf32>
    %475 = vector.multi_reduction <add>, %432, %cst_108 [1] : vector<2x32xf32> to vector<2xf32>
    %476 = vector.shape_cast %475 : vector<2xf32> to vector<2x1xf32>
    %477 = vector.broadcast %0 : f32 to vector<2x1xf32>
    %478 = arith.mulf %477, %476 : vector<2x1xf32>
    %479 = math.absf %478 : vector<2x1xf32>
    %c0_109 = arith.constant 0 : index
    %c7_110 = arith.constant 7 : index
    %480 = vector.load %arg8[%c0_109, %c7_110] : memref<2x8xf32, #tpu.memory_space<vmem>>, vector<2x1xf32>
    tpu.vector_store %arg8[%c0_109, %c7_110], %479 {strides = array<i32>} : memref<2x8xf32, #tpu.memory_space<vmem>>, vector<2x1xf32>,
    return
  }
}

</mosaic_0001>

<bundles_post_ra>
// kernel: gru_forward.1
= control target key start
LH: loop header
LB: loop body
LE: loop exit
PB: predicated region body
PF: predicated region fallthrough
CT: control target
= control target key end

     0   :  { %14 = vsyncpa [#allocation4], 0  ;;  %s2061_s0 = inlined_call_operand.vmem [shape: f32[8,2,96], index: 0, kind: input, shape index: {}]   ;;  %s2062_s1 = inlined_call_operand.<no memory space> [shape: f32[1,1], index: 1, kind: input, shape index: {}]   ;;  %s2063_s2 = inlined_call_operand.vmem [shape: f32[32,96], index: 2, kind: input, shape index: {}]   ;;  %s2064_s3 = inlined_call_operand.vmem [shape: f32[1,96], index: 3, kind: input, shape index: {}]   ;;  %s2065_s4 = inlined_call_operand.hbm [shape: f32[32,96], index: 4, kind: input, shape index: {}]   ;;  %s2066_s5 = inlined_call_operand.vmem [shape: f32[1,96], index: 5, kind: input, shape index: {}]   ;;  %s2067_s6 = inlined_call_operand.hbm [shape: f32[32,96], index: 6, kind: input, shape index: {}]   ;;  %s2068_s7 = inlined_call_operand.vmem [shape: f32[1,96], index: 7, kind: input, shape index: {}]   ;;  %s2069_s8 = inlined_call_operand.hbm [shape: f32[2,8], index: 8, kind: output, shape index: {}]  }
   0x1   :  { %15 = vsyncpa [#allocation7], 0 }
   0x2   :  { %16 = vsyncpa [#allocation5], 0  ;;  %s29_s29 = sshll.u32 %s2065_s4, 4  ;;  %s1652_s30 = smov [#allocation3]   ;;  %s30_s29 = int_to_ptr.hbm [resolvable:$true] %s29_s29 }
   0x3   :  { %s31_s9 = sshll.u32 %s1652_s30, 4  ;;  %s44_s12 = sshll.u32 %s2067_s6, 4  ;;  %s32_s9 = int_to_ptr.vmem [resolvable:$true] %s31_s9  ;;  %s45_s12 = int_to_ptr.hbm [resolvable:$true] %s44_s12 }
   0x4   :  { %s1653_s13 = smov 128   ;;  %s1654_s14 = smov 8  }
   0x5   :  { %37 = dma.hbm_to_vmem [thread:$0]  %s30_s29, 512, %s32_s9, [#allocation4], %s1653_s13, %s1653_s13, %s1654_s14  }
   0x6   :  { %s1655_s15 = smov [#allocation6]  }
   0x7   :  { %s46_s16 = sshll.u32 %s1655_s15, 4  ;;  %s47_s16 = int_to_ptr.vmem [resolvable:$true] %s46_s16 }
   0x8   :  { %52 = dma.hbm_to_vmem [thread:$0]  %s45_s12, 512, %s47_s16, [#allocation7], %s1653_s13, %s1653_s13, %s1654_s14  }
   0x9   :  { %1646 = dma.done.wait [#allocation4], 512  }
   0xa   :  { %1647 = vsyncadd [#allocation4], 4294966784 }
   0xb   :  { %1648 = dma.done.wait [#allocation7], 512  }
   0xc   :  { %1649 = vsyncadd [#allocation7], 4294966784  ;;  %v67_v0 = vld [vmem:[%s2063_s2 + $0x18] sm:$0xff]  ;;  %v66_v1 = vld [vmem:[%s2063_s2 + $0x10] sm:$0xff]  ;;  %v1656_v4 = vmov 0.0   ;;  %s1657_s24 = smov 64  }
   0xd   :  { %88 = vmatpush.msra.mxu0 %v67_v0  ;;  %156 = vmatpush.msra.mxu1 %v67_v0  ;;  %v65_v2 = vld [vmem:[%s2063_s2 + $0x8] sm:$0xff]  ;;  %v64_v3 = vld [vmem:[%s2063_s2] sm:$0xff]  ;;  %s1659_s27 = smov 32   ;;  %vm72_vm4 = vcmask 261120   ;;  %s1410_s23 = sshll.u32 %s2069_s8, 4  ;;  %s1411_s23 = int_to_ptr.hbm [resolvable:$true] %s1410_s23 }
   0xe   :  { %225 = vmatpush.msra.mxu2 %v67_v0  ;;  %294 = vmatpush.msra.mxu3 %v67_v0  ;;  %v1728_v5 = vld [vmem:[%s2064_s3] ss:$0 sm:$0xff]  ;;  %s1658_s3 = smov 96   ;;  %v1423_v36 = vld [vmem:[%s2061_s0 + $0x2] sm:$0x3] }
   0xf   :  { %89 = vmatpush.msra.mxu0 %v66_v1  ;;  %157 = vmatpush.msra.mxu1 %v66_v1  ;;  %v96_v8 = vld [vmem:[%s2061_s0] sm:$0x3] }
  0x10   :  { %226 = vmatpush.msra.mxu2 %v66_v1  ;;  %295 = vmatpush.msra.mxu3 %v66_v1 }
  0x11   :  { %90 = vmatpush.msra.mxu0 %v65_v2  ;;  %158 = vmatpush.msra.mxu1 %v65_v2 }
  0x12   :  { %227 = vmatpush.msra.mxu2 %v65_v2  ;;  %296 = vmatpush.msra.mxu3 %v65_v2 }
  0x13   :  { %91 = vmatpush.msra.mxu0 %v64_v3  ;;  %159 = vmatpush.msra.mxu1 %v64_v3 }
  0x14   :  { %92 = vmatmul.f32.vlgmr.msra.gmra.mxu0 %v1656_v4  ;;  %228 = vmatpush.msra.mxu2 %v64_v3 }
  0x15   :  { %297 = vmatpush.msra.mxu3 %v64_v3  ;;  %363 = vmatpush.msrb.mxu0 %v67_v0 }
  0x16   :  { %432 = vmatpush.msrb.mxu1 %v67_v0  ;;  %501 = vmatpush.msrb.mxu2 %v67_v0 }
  0x17   :  { %364 = vmatpush.msrb.mxu0 %v66_v1  ;;  %570 = vmatpush.msrb.mxu3 %v67_v0  ;;  %v1426_v0 = vld [vmem:[%s2061_s0 + $0x4] sm:$0x3] }
  0x18   :  { %433 = vmatpush.msrb.mxu1 %v66_v1  ;;  %502 = vmatpush.msrb.mxu2 %v66_v1 }
  0x19   :  { %365 = vmatpush.msrb.mxu0 %v65_v2  ;;  %571 = vmatpush.msrb.mxu3 %v66_v1 }
  0x1a   :  { %434 = vmatpush.msrb.mxu1 %v65_v2  ;;  %503 = vmatpush.msrb.mxu2 %v65_v2 }
  0x1b   :  { %366 = vmatpush.msrb.mxu0 %v64_v3  ;;  %572 = vmatpush.msrb.mxu3 %v65_v2 }
  0x1c   :  { %435 = vmatpush.msrb.mxu1 %v64_v3  ;;  %504 = vmatpush.msrb.mxu2 %v64_v3 }
  0x1d   :  { %573 = vmatpush.msrb.mxu3 %v64_v3 }
  0x91   :  { %v93_v6 = vpop.f32.mrf.mxu0 }
  0x92   :  { %v94_v7 = vadd.f32 %v1728_v5, %v93_v6 }
  0x94   :  { %118 = vrot.lane.b32.xlu0 %v94_v7, %s1657_s24  ;;  %v97_v9 = vadd.f32 %v96_v8, %v94_v7 }
  0x96   :  { %v1421_v10 = vmul.f32 -1.442695, %v97_v9 }
  0x98   :  { %1478 = vpow2.f32 %v1421_v10 }
  0x9e   :  { %v1479_v11 = vpop.eup %1478 }
  0x9f   :  { %v101_v12 = vadd.f32 1.0, %v1479_v11 }
  0xa1   :  { %1480 = vrcp.f32 %v101_v12  ;;  %v113_v18 = vand.u32 2147483648, %v101_v12  ;;  %vm107_vm1 = vweird.f32 %v101_v12  ;;  %v111_v19 = vand.u32 2147483647, %v101_v12 }
  0xa3   :  { %v114_v21 = vor.u32 1.1754944e-38, %v113_v18  ;;  %vm112_vm3 = vcmp.eq.f32.partialorder %v111_v19, 8.507059e+37 }
  0xa7   :  { %v1481_v13 = vpop.eup %1480 }
  0xa8   :  { %v103_v14 = vmul.f32 %v1481_v13, %v101_v12  ;;  %vm108_vm0 = vweird.f32 %v1481_v13 }
  0xa9   :  { %vm109_vm2 = vmor %vm107_vm1, %vm108_vm0 }
  0xaa   :  { %v104_v15 = vsub.f32 1.0, %v103_v14 }
  0xac   :  { %v105_v16 = vmul.f32 %v1481_v13, %v104_v15 }
  0xae   :  { %v106_v17 = vadd.f32 %v1481_v13, %v105_v16 }
  0xb0   :  { %v110_v20 = vsel %vm109_vm2, %v1481_v13, %v106_v17 }
  0xb1   :  { %v115_v23 = vsel %vm112_vm3, %v114_v21, %v110_v20 }
 0x106   :  { %v119_v22 = vpop.permute.xlu0 %118 }
 0x107   :  { %v121_v24 = vmul.f32 %v119_v22, %v115_v23 }
 0x109   :  { %123 = vrot.lane.b32.xlu0 %v121_v24, %s1657_s24 }
 0x17b   :  { %v124_v25 = vpop.permute.xlu0 %123 }
 0x17c   :  { %v126_v26 = vadd.f32 %v124_v25, %v96_v8 }
 0x17e   :  { %1482 = vtanh.f32 %v126_v26 }
 0x184   :  { %v1483_v27 = vpop.eup %1482 }
 0x185   :  { %v128_v28 = vsub.f32 0.0, %v1483_v27 }
 0x187   :  { %130 = vrot.lane.b32.xlu1 %v128_v28, %s1658_s3 }
 0x1f9   :  { %v131_v29 = vpop.permute.xlu1 %130 }
 0x1fa   :  { %v133_v30 = vmul.f32 %v131_v29, %v115_v23 }
 0x1fc   :  { %135 = vrot.lane.b32.xlu1 %v133_v30, %s1659_s27  ;;  %v1429_v30 = vld [vmem:[%s2061_s0 + $0x6] sm:$0x3] }
 0x26e   :  { %v136_v31 = vpop.permute.xlu1 %135 }
 0x26f   :  { %v138_v32 = vadd.f32 %v1483_v27, %v136_v31 }
 0x271   :  { %140 = vrot.lane.b32.xlu2 %v138_v32, %s1657_s24 }
 0x2cb   :  { %v1739_v33 = vpop.permute.xlu2 %140 }
 0x2cc   :  { %1422 = vmatmul.msk.f32.vlgmr.msra.gmra.mxu1 %vm72_vm4, %v1739_v33 }
 0x349   :  { %v161_v34 = vpop.f32.mrf.mxu1 }
 0x34a   :  { %v162_v35 = vadd.f32 %v1728_v5, %v161_v34 }
 0x34c   :  { %187 = vrot.lane.b32.xlu2 %v162_v35, %s1657_s24  ;;  %v166_v37 = vadd.f32 %v1423_v36, %v162_v35 }
 0x34e   :  { %v1424_v38 = vmul.f32 -1.442695, %v166_v37 }
 0x350   :  { %1484 = vpow2.f32 %v1424_v38 }
 0x356   :  { %v1485_v39 = vpop.eup %1484 }
 0x357   :  { %v170_v40 = vadd.f32 1.0, %v1485_v39 }
 0x359   :  { %1486 = vrcp.f32 %v170_v40  ;;  %v182_v46 = vand.u32 2147483648, %v170_v40  ;;  %vm176_vm6 = vweird.f32 %v170_v40  ;;  %v180_v47 = vand.u32 2147483647, %v170_v40 }
 0x35b   :  { %v183_v49 = vor.u32 1.1754944e-38, %v182_v46  ;;  %vm181_vm8 = vcmp.eq.f32.partialorder %v180_v47, 8.507059e+37 }
 0x35f   :  { %v1487_v41 = vpop.eup %1486 }
 0x360   :  { %v172_v42 = vmul.f32 %v1487_v41, %v170_v40  ;;  %vm177_vm5 = vweird.f32 %v1487_v41 }
 0x361   :  { %vm178_vm7 = vmor %vm176_vm6, %vm177_vm5 }
 0x362   :  { %v173_v43 = vsub.f32 1.0, %v172_v42 }
 0x364   :  { %v174_v44 = vmul.f32 %v1487_v41, %v173_v43 }
 0x366   :  { %v175_v45 = vadd.f32 %v1487_v41, %v174_v44 }
 0x368   :  { %v179_v48 = vsel %vm178_vm7, %v1487_v41, %v175_v45 }
 0x369   :  { %v184_v51 = vsel %vm181_vm8, %v183_v49, %v179_v48 }
 0x3a6   :  { %v188_v50 = vpop.permute.xlu2 %187 }
 0x3a7   :  { %v190_v52 = vmul.f32 %v188_v50, %v184_v51 }
 0x3a9   :  { %192 = vrot.lane.b32.xlu0 %v190_v52, %s1657_s24 }
 0x41b   :  { %v193_v53 = vpop.permute.xlu0 %192 }
 0x41c   :  { %v195_v54 = vadd.f32 %v1423_v36, %v193_v53 }
 0x41e   :  { %1488 = vtanh.f32 %v195_v54 }
 0x424   :  { %v1489_v55 = vpop.eup %1488 }
 0x425   :  { %v197_v56 = vsub.f32 %v138_v32, %v1489_v55 }
 0x427   :  { %199 = vrot.lane.b32.xlu1 %v197_v56, %s1658_s3  ;;  %v1778_v56 = vld [vmem:[#allocation3 + $0x18] sm:$0xff] }
 0x428   :  { %647 = vmatpush.msra.mxu0 %v1778_v56  ;;  %667 = vmatpush.msra.mxu1 %v1778_v56 }
 0x499   :  { %v200_v57 = vpop.permute.xlu1 %199 }
 0x49a   :  { %v202_v58 = vmul.f32 %v200_v57, %v184_v51  ;;  %v1780_v57 = vld [vmem:[#allocation3 + $0x10] sm:$0xff] }
 0x49b   :  { %648 = vmatpush.msra.mxu0 %v1780_v57  ;;  %668 = vmatpush.msra.mxu1 %v1780_v57 }
 0x49c   :  { %204 = vrot.lane.b32.xlu2 %v202_v58, %s1659_s27  ;;  %v1784_v58 = vld [vmem:[#allocation3 + $0x8] sm:$0xff] }
 0x49d   :  { %649 = vmatpush.msra.mxu0 %v1784_v58  ;;  %669 = vmatpush.msra.mxu1 %v1784_v58 }
 0x4f6   :  { %v205_v59 = vpop.permute.xlu2 %204 }
 0x4f7   :  { %v207_v60 = vadd.f32 %v1489_v55, %v205_v59  ;;  %v1790_v59 = vld [vmem:[#allocation3] sm:$0xff] }
 0x4f8   :  { %650 = vmatpush.msra.mxu0 %v1790_v59  ;;  %670 = vmatpush.msra.mxu1 %v1790_v59 }
 0x4f9   :  { %209 = vrot.lane.b32.xlu0 %v207_v60, %s1657_s24 }
 0x56b   :  { %v1752_v61 = vpop.permute.xlu0 %209 }
 0x56c   :  { %1425 = vmatmul.msk.f32.vlgmr.msra.gmra.mxu2 %vm72_vm4, %v1752_v61 }
 0x56d   :  { %687 = vmatpush.msra.mxu2 %v1778_v56 }
 0x56f   :  { %688 = vmatpush.msra.mxu2 %v1780_v57 }
 0x571   :  { %689 = vmatpush.msra.mxu2 %v1784_v58 }
 0x573   :  { %690 = vmatpush.msra.mxu2 %v1790_v59 }
 0x5ef   :  { %v230_v62 = vpop.f32.mrf.mxu2 }
 0x5f0   :  { %v231_v63 = vadd.f32 %v1728_v5, %v230_v62 }
 0x5f2   :  { %256 = vrot.lane.b32.xlu1 %v231_v63, %s1657_s24  ;;  %v235_v1 = vadd.f32 %v1426_v0, %v231_v63 }
 0x5f4   :  { %v1427_v2 = vmul.f32 -1.442695, %v235_v1 }
 0x5f6   :  { %1490 = vpow2.f32 %v1427_v2 }
 0x5fc   :  { %v1491_v3 = vpop.eup %1490 }
 0x5fd   :  { %v239_v6 = vadd.f32 1.0, %v1491_v3 }
 0x5ff   :  { %1492 = vrcp.f32 %v239_v6  ;;  %v251_v12 = vand.u32 2147483648, %v239_v6  ;;  %vm245_vm10 = vweird.f32 %v239_v6  ;;  %v249_v13 = vand.u32 2147483647, %v239_v6 }
 0x601   :  { %v252_v15 = vor.u32 1.1754944e-38, %v251_v12  ;;  %vm250_vm12 = vcmp.eq.f32.partialorder %v249_v13, 8.507059e+37 }
 0x605   :  { %v1493_v7 = vpop.eup %1492 }
 0x606   :  { %v241_v8 = vmul.f32 %v1493_v7, %v239_v6  ;;  %vm246_vm9 = vweird.f32 %v1493_v7 }
 0x607   :  { %vm247_vm11 = vmor %vm245_vm10, %vm246_vm9 }
 0x608   :  { %v242_v9 = vsub.f32 1.0, %v241_v8 }
 0x60a   :  { %v243_v10 = vmul.f32 %v1493_v7, %v242_v9 }
 0x60c   :  { %v244_v11 = vadd.f32 %v1493_v7, %v243_v10 }
 0x60e   :  { %v248_v14 = vsel %vm247_vm11, %v1493_v7, %v244_v11 }
 0x60f   :  { %v253_v17 = vsel %vm250_vm12, %v252_v15, %v248_v14 }
 0x664   :  { %v257_v16 = vpop.permute.xlu1 %256 }
 0x665   :  { %v259_v18 = vmul.f32 %v257_v16, %v253_v17 }
 0x667   :  { %261 = vrot.lane.b32.xlu2 %v259_v18, %s1657_s24 }
 0x6c1   :  { %v262_v19 = vpop.permute.xlu2 %261 }
 0x6c2   :  { %v264_v20 = vadd.f32 %v1426_v0, %v262_v19  ;;  %v1432_v0 = vld [vmem:[%s2061_s0 + $0x8] sm:$0x3] }
 0x6c4   :  { %1494 = vtanh.f32 %v264_v20 }
 0x6ca   :  { %v1495_v21 = vpop.eup %1494 }
 0x6cb   :  { %v266_v22 = vsub.f32 %v207_v60, %v1495_v21 }
 0x6cd   :  { %268 = vrot.lane.b32.xlu0 %v266_v22, %s1658_s3 }
 0x73f   :  { %v269_v23 = vpop.permute.xlu0 %268 }
 0x740   :  { %v271_v24 = vmul.f32 %v269_v23, %v253_v17 }
 0x742   :  { %273 = vrot.lane.b32.xlu1 %v271_v24, %s1659_s27 }
 0x7b4   :  { %v274_v25 = vpop.permute.xlu1 %273 }
 0x7b5   :  { %v276_v26 = vadd.f32 %v1495_v21, %v274_v25 }
 0x7b7   :  { %278 = vrot.lane.b32.xlu2 %v276_v26, %s1657_s24 }
 0x811   :  { %v1765_v27 = vpop.permute.xlu2 %278 }
 0x812   :  { %1428 = vmatmul.msk.f32.vlgmr.msra.gmra.mxu3 %vm72_vm4, %v1765_v27 }
 0x813   :  { %707 = vmatpush.msra.mxu3 %v1778_v56 }
 0x815   :  { %708 = vmatpush.msra.mxu3 %v1780_v57 }
 0x817   :  { %709 = vmatpush.msra.mxu3 %v1784_v58 }
 0x819   :  { %710 = vmatpush.msra.mxu3 %v1790_v59 }
 0x895   :  { %v299_v28 = vpop.f32.mrf.mxu3 }
 0x896   :  { %v300_v29 = vadd.f32 %v1728_v5, %v299_v28  ;;  %v1826_v28 = vld [vmem:[#allocation6 + $0x10] sm:$0xff] }
 0x898   :  { %325 = vrot.lane.b32.xlu0 %v300_v29, %s1657_s24  ;;  %v304_v31 = vadd.f32 %v1429_v30, %v300_v29  ;;  %v1829_v29 = vld [vmem:[#allocation6 + $0x8] sm:$0xff] }
 0x89a   :  { %v1430_v32 = vmul.f32 -1.442695, %v304_v31 }
 0x89c   :  { %1496 = vpow2.f32 %v1430_v32 }
 0x8a2   :  { %v1497_v34 = vpop.eup %1496 }
 0x8a3   :  { %v308_v35 = vadd.f32 1.0, %v1497_v34 }
 0x8a5   :  { %1498 = vrcp.f32 %v308_v35  ;;  %v320_v41 = vand.u32 2147483648, %v308_v35  ;;  %vm314_vm14 = vweird.f32 %v308_v35  ;;  %v318_v42 = vand.u32 2147483647, %v308_v35 }
 0x8a7   :  { %v321_v44 = vor.u32 1.1754944e-38, %v320_v41  ;;  %vm319_vm0 = vcmp.eq.f32.partialorder %v318_v42, 8.507059e+37  ;;  %v1435_v42 = vld [vmem:[%s2061_s0 + $0xa] sm:$0x3] }
 0x8ab   :  { %v1499_v36 = vpop.eup %1498 }
 0x8ac   :  { %v310_v37 = vmul.f32 %v1499_v36, %v308_v35  ;;  %vm315_vm13 = vweird.f32 %v1499_v36 }
 0x8ad   :  { %vm316_vm15 = vmor %vm314_vm14, %vm315_vm13 }
 0x8ae   :  { %v311_v38 = vsub.f32 1.0, %v310_v37 }
 0x8b0   :  { %v312_v39 = vmul.f32 %v1499_v36, %v311_v38  ;;  %v1867_v38 = vld [vmem:[%s2066_s5] ss:$0 sm:$0xff] }
 0x8b2   :  { %v313_v40 = vadd.f32 %v1499_v36, %v312_v39 }
 0x8b4   :  { %v317_v43 = vsel %vm316_vm15, %v1499_v36, %v313_v40 }
 0x8b5   :  { %v322_v46 = vsel %vm319_vm0, %v321_v44, %v317_v43 }
 0x90a   :  { %v326_v45 = vpop.permute.xlu0 %325 }
 0x90b   :  { %v328_v47 = vmul.f32 %v326_v45, %v322_v46 }
 0x90d   :  { %330 = vrot.lane.b32.xlu1 %v328_v47, %s1657_s24 }
 0x97f   :  { %v331_v48 = vpop.permute.xlu1 %330 }
 0x980   :  { %v333_v49 = vadd.f32 %v1429_v30, %v331_v48  ;;  %v1832_v30 = vld [vmem:[#allocation6] sm:$0xff] }
 0x982   :  { %1500 = vtanh.f32 %v333_v49 }
 0x988   :  { %v1501_v50 = vpop.eup %1500 }
 0x989   :  { %v335_v51 = vsub.f32 %v276_v26, %v1501_v50  ;;  %v1824_v26 = vld [vmem:[#allocation6 + $0x18] sm:$0xff] }
 0x98b   :  { %337 = vrot.lane.b32.xlu2 %v335_v51, %s1658_s3 }
 0x9e5   :  { %v338_v52 = vpop.permute.xlu2 %337 }
 0x9e6   :  { %v340_v53 = vmul.f32 %v338_v52, %v322_v46 }
 0x9e8   :  { %342 = vrot.lane.b32.xlu0 %v340_v53, %s1659_s27 }
 0xa5a   :  { %v343_v54 = vpop.permute.xlu0 %342 }
 0xa5b   :  { %v345_v55 = vadd.f32 %v1501_v50, %v343_v54 }
 0xa5d   :  { %347 = vrot.lane.b32.xlu1 %v345_v55, %s1657_s24 }
 0xacf   :  { %v1802_v60 = vpop.permute.xlu1 %347 }
 0xad0   :  { %1431 = vmatmul.msk.f32.vlgmr.msrb.gmra.mxu0 %vm72_vm4, %v1802_v60 }
 0xad1   :  { %727 = vmatpush.msrb.mxu0 %v1778_v56 }
 0xad3   :  { %728 = vmatpush.msrb.mxu0 %v1780_v57 }
 0xad5   :  { %729 = vmatpush.msrb.mxu0 %v1784_v58 }
 0xad7   :  { %730 = vmatpush.msrb.mxu0 %v1790_v59 }
 0xad8   :  { %1443 = vmatmul.msk.f32.vlgmr.msra.gmra.mxu0 %vm72_vm4, %v1739_v33 }
 0xad9   :  { %815 = vmatpush.msra.mxu0 %v1824_v26 }
 0xadb   :  { %816 = vmatpush.msra.mxu0 %v1826_v28 }
 0xadd   :  { %817 = vmatpush.msra.mxu0 %v1829_v29 }
 0xadf   :  { %818 = vmatpush.msra.mxu0 %v1832_v30 }
 0xb4d   :  { %v368_v62 = vpop.f32.mrf.mxu0 }
 0xb4e   :  { %v369_v63 = vadd.f32 %v1728_v5, %v368_v62 }
 0xb50   :  { %394 = vrot.lane.b32.xlu2 %v369_v63, %s1657_s24  ;;  %v373_v1 = vadd.f32 %v1432_v0, %v369_v63 }
 0xb52   :  { %v1433_v2 = vmul.f32 -1.442695, %v373_v1 }
 0xb54   :  { %1502 = vpow2.f32 %v1433_v2 }
 0xb55   :  { %v652_v32 = vpop.f32.mrf.mxu0 }
 0xb56   :  { %v653_v39 = vadd.f32 %v1867_v38, %v652_v32 }
 0xb5a   :  { %v1503_v3 = vpop.eup %1502 }
 0xb5b   :  { %v377_v6 = vadd.f32 1.0, %v1503_v3 }
 0xb5d   :  { %1504 = vrcp.f32 %v377_v6  ;;  %v389_v11 = vand.u32 2147483648, %v377_v6  ;;  %vm383_vm2 = vweird.f32 %v377_v6  ;;  %v387_v12 = vand.u32 2147483647, %v377_v6 }
 0xb5f   :  { %v390_v14 = vor.u32 1.1754944e-38, %v389_v11  ;;  %vm388_vm5 = vcmp.eq.f32.partialorder %v387_v12, 8.507059e+37 }
 0xb63   :  { %v1505_v7 = vpop.eup %1504 }
 0xb64   :  { %v379_v8 = vmul.f32 %v1505_v7, %v377_v6  ;;  %vm384_vm1 = vweird.f32 %v1505_v7 }
 0xb65   :  { %vm385_vm3 = vmor %vm383_vm2, %vm384_vm1 }
 0xb66   :  { %v380_v9 = vsub.f32 1.0, %v379_v8 }
 0xb68   :  { %v381_v10 = vmul.f32 %v1505_v7, %v380_v9 }
 0xb6a   :  { %v382_v33 = vadd.f32 %v1505_v7, %v381_v10 }
 0xb6c   :  { %v386_v13 = vsel %vm385_vm3, %v1505_v7, %v382_v33 }
 0xb6d   :  { %v391_v16 = vsel %vm388_vm5, %v390_v14, %v386_v13 }
 0xbaa   :  { %v395_v15 = vpop.permute.xlu2 %394 }
 0xbab   :  { %v397_v17 = vmul.f32 %v395_v15, %v391_v16 }
 0xbad   :  { %399 = vrot.lane.b32.xlu0 %v397_v17, %s1657_s24 }
 0xc1f   :  { %v400_v18 = vpop.permute.xlu0 %399 }
 0xc20   :  { %v402_v19 = vadd.f32 %v1432_v0, %v400_v18 }
 0xc22   :  { %1506 = vtanh.f32 %v402_v19 }
 0xc28   :  { %v1507_v20 = vpop.eup %1506 }
 0xc29   :  { %v404_v21 = vsub.f32 %v345_v55, %v1507_v20 }
 0xc2b   :  { %406 = vrot.lane.b32.xlu1 %v404_v21, %s1658_s3 }
 0xc9d   :  { %v407_v22 = vpop.permute.xlu1 %406 }
 0xc9e   :  { %v409_v23 = vmul.f32 %v407_v22, %v391_v16 }
 0xca0   :  { %411 = vrot.lane.b32.xlu2 %v409_v23, %s1659_s27 }
 0xcfa   :  { %v412_v24 = vpop.permute.xlu2 %411 }
 0xcfb   :  { %v1820_v25 = vadd.f32 %v1507_v20, %v412_v24 }
 0xcfd   :  { %416 = vrot.lane.b32.xlu0 %v1820_v25, %s1657_s24 }
 0xd6f   :  { %v417_v31 = vpop.permute.xlu0 %416 }
 0xd70   :  { %1434 = vmatmul.msk.f32.vlgmr.msrb.gmra.mxu1 %vm72_vm4, %v417_v31  ;;  %1447 = vmatmul.msk.f32.vlgmr.msrb.gmra.mxu0 %vm72_vm4, %v417_v31 }
 0xd71   :  { %747 = vmatpush.msrb.mxu1 %v1778_v56  ;;  %1083 = vmatpush.msrb.mxu0 %v1824_v26 }
 0xd73   :  { %748 = vmatpush.msrb.mxu1 %v1780_v57  ;;  %1084 = vmatpush.msrb.mxu0 %v1826_v28 }
 0xd75   :  { %749 = vmatpush.msrb.mxu1 %v1784_v58  ;;  %1085 = vmatpush.msrb.mxu0 %v1829_v29 }
 0xd77   :  { %750 = vmatpush.msrb.mxu1 %v1790_v59  ;;  %1086 = vmatpush.msrb.mxu0 %v1832_v30 }
 0xd78   :  { %1444 = vmatmul.msk.f32.vlgmr.msra.gmra.mxu1 %vm72_vm4, %v1752_v61  ;;  %819 = vmatmul.f32.vlgmr.msra.gmra.mxu0 %v1656_v4  ;;  %v1860_v4 = vld [vmem:[%s2068_s7] ss:$0 sm:$0xff] }
 0xd79   :  { %882 = vmatpush.msra.mxu1 %v1824_v26 }
 0xd7b   :  { %883 = vmatpush.msra.mxu1 %v1826_v28 }
 0xd7d   :  { %884 = vmatpush.msra.mxu1 %v1829_v29 }
 0xd7f   :  { %885 = vmatpush.msra.mxu1 %v1832_v30 }
 0xded   :  { %v437_v34 = vpop.f32.mrf.mxu1  ;;  %v1853_v35 = vpop.f32.mrf.mxu0 }
 0xdee   :  { %v438_v36 = vadd.f32 %v1728_v5, %v437_v34 }
 0xdf0   :  { %463 = vrot.lane.b32.xlu1 %v438_v36, %s1657_s24  ;;  %v442_v44 = vadd.f32 %v1435_v42, %v438_v36 }
 0xdf2   :  { %v1436_v46 = vmul.f32 -1.442695, %v442_v44 }
 0xdf5   :  { %v820_v61 = vpop.f32.mrf.mxu0 }
 0xdf6   :  { %v821_v37 = vadd.f32 %v1860_v4, %v820_v61 }
 0xdf8   :  { %844 = vrot.lane.b32.xlu2 %v821_v37, %s1657_s24  ;;  %v823_v40 = vadd.f32 %v821_v37, %v653_v39 }
 0xdfa   :  { %v1451_v41 = vmul.f32 -1.442695, %v823_v40 }
 0xdfc   :  { %1508 = vpow2.f32 %v1451_v41  ;;  %v672_v41 = vpop.f32.mrf.mxu1 }
 0xe02   :  { %v1509_v43 = vpop.eup %1508 }
 0xe03   :  { %v827_v45 = vadd.f32 1.0, %v1509_v43 }
 0xe05   :  { %1510 = vrcp.f32 %v827_v45  ;;  %v839_v55 = vand.u32 2147483648, %v827_v45  ;;  %vm833_vm7 = vweird.f32 %v827_v45  ;;  %v837_v62 = vand.u32 2147483647, %v827_v45 }
 0xe06   :  { %1512 = vpow2.f32 %v1436_v46  ;;  %v1438_v46 = vld [vmem:[%s2061_s0 + $0xc] sm:$0x3] }
 0xe07   :  { %v840_v1 = vor.u32 1.1754944e-38, %v839_v55  ;;  %vm838_vm9 = vcmp.eq.f32.partialorder %v837_v62, 8.507059e+37 }
 0xe0b   :  { %v1511_v47 = vpop.eup %1510 }
 0xe0c   :  { %v1513_v48 = vpop.eup %1512  ;;  %v829_v49 = vmul.f32 %v1511_v47, %v827_v45  ;;  %vm834_vm6 = vweird.f32 %v1511_v47 }
 0xe0d   :  { %v446_v50 = vadd.f32 1.0, %v1513_v48  ;;  %vm835_vm8 = vmor %vm833_vm7, %vm834_vm6 }
 0xe0e   :  { %v830_v51 = vsub.f32 1.0, %v829_v49 }
 0xe0f   :  { %1514 = vrcp.f32 %v446_v50  ;;  %v458_v10 = vand.u32 2147483648, %v446_v50  ;;  %vm452_vm11 = vweird.f32 %v446_v50  ;;  %v456_v33 = vand.u32 2147483647, %v446_v50 }
 0xe10   :  { %v831_v52 = vmul.f32 %v1511_v47, %v830_v51  ;;  %v673_v51 = vadd.f32 %v1867_v38, %v672_v41 }
 0xe11   :  { %v459_v12 = vor.u32 1.1754944e-38, %v458_v10  ;;  %vm457_vm13 = vcmp.eq.f32.partialorder %v456_v33, 8.507059e+37 }
 0xe12   :  { %v832_v53 = vadd.f32 %v1511_v47, %v831_v52 }
 0xe14   :  { %v836_v63 = vsel %vm835_vm8, %v1511_v47, %v832_v53 }
 0xe15   :  { %v1515_v54 = vpop.eup %1514  ;;  %v841_v3 = vsel %vm838_vm9, %v840_v1, %v836_v63 }
 0xe16   :  { %v448_v0 = vmul.f32 %v1515_v54, %v446_v50  ;;  %vm453_vm10 = vweird.f32 %v1515_v54 }
 0xe17   :  { %vm454_vm12 = vmor %vm452_vm11, %vm453_vm10 }
 0xe18   :  { %v449_v7 = vsub.f32 1.0, %v448_v0 }
 0xe1a   :  { %v450_v8 = vmul.f32 %v1515_v54, %v449_v7 }
 0xe1c   :  { %v451_v9 = vadd.f32 %v1515_v54, %v450_v8 }
 0xe1e   :  { %v455_v11 = vsel %vm454_vm12, %v1515_v54, %v451_v9 }
 0xe1f   :  { %v460_v14 = vsel %vm457_vm13, %v459_v12, %v455_v11 }
 0xe52   :  { %v845_v2 = vpop.permute.xlu2 %844 }
 0xe53   :  { %v847_v6 = vmul.f32 %v845_v2, %v841_v3 }
 0xe55   :  { %849 = vrot.lane.b32.xlu1 %v847_v6, %s1657_s24 }
 0xe62   :  { %v464_v13 = vpop.permute.xlu1 %463 }
 0xe63   :  { %v466_v15 = vmul.f32 %v464_v13, %v460_v14 }
 0xe65   :  { %468 = vrot.lane.b32.xlu0 %v466_v15, %s1657_s24 }
 0xec7   :  { %v850_v16 = vpop.permute.xlu1 %849 }
 0xec8   :  { %v852_v17 = vadd.f32 %v850_v16, %v653_v39 }
 0xeca   :  { %1516 = vtanh.f32 %v852_v17 }
 0xed0   :  { %v1517_v18 = vpop.eup %1516 }
 0xed1   :  { %v854_v19 = vsub.f32 0.0, %v1517_v18 }
 0xed3   :  { %856 = vrot.lane.b32.xlu0 %v854_v19, %s1658_s3 }
 0xed7   :  { %v469_v20 = vpop.permute.xlu0 %468 }
 0xed8   :  { %v471_v21 = vadd.f32 %v1435_v42, %v469_v20 }
 0xeda   :  { %1518 = vtanh.f32 %v471_v21 }
 0xee0   :  { %v1519_v22 = vpop.eup %1518 }
 0xee1   :  { %v473_v23 = vsub.f32 %v1820_v25, %v1519_v22 }
 0xee3   :  { %475 = vrot.lane.b32.xlu2 %v473_v23, %s1658_s3 }
 0xf3d   :  { %v476_v24 = vpop.permute.xlu2 %475 }
 0xf3e   :  { %v478_v31 = vmul.f32 %v476_v24, %v460_v14 }
 0xf40   :  { %480 = vrot.lane.b32.xlu1 %v478_v31, %s1659_s27 }
 0xf45   :  { %v857_v32 = vpop.permute.xlu0 %856 }
 0xf46   :  { %v859_v34 = vmul.f32 %v857_v32, %v841_v3 }
 0xf48   :  { %861 = vrot.lane.b32.xlu2 %v859_v34, %s1659_s27 }
 0xfa2   :  { %v862_v36 = vpop.permute.xlu2 %861 }
 0xfa3   :  { %v1880_v61 = vadd.f32 %v1517_v18, %v862_v36 }
 0xfa5   :  { %866 = vrot.lane.b32.xlu1 %v1880_v61, %s1657_s24 }
 0xfb2   :  { %v481_v37 = vpop.permute.xlu1 %480 }
 0xfb3   :  { %v1884_v39 = vadd.f32 %v1519_v22, %v481_v37 }
 0xfb5   :  { %485 = vrot.lane.b32.xlu0 %v1884_v39, %s1657_s24 }
0x1017   :  { %v1896_v40 = vpop.permute.xlu1 %866 }
0x1027   :  { %v486_v25 = vpop.permute.xlu0 %485 }
0x1028   :  { %1437 = vmatmul.msk.f32.vlgmr.msrb.gmra.mxu2 %vm72_vm4, %v486_v25  ;;  %1448 = vmatmul.msk.f32.vlgmr.msrb.gmra.mxu1 %vm72_vm4, %v486_v25 }
0x1029   :  { %767 = vmatpush.msrb.mxu2 %v1778_v56  ;;  %1150 = vmatpush.msrb.mxu1 %v1824_v26 }
0x102b   :  { %768 = vmatpush.msrb.mxu2 %v1780_v57  ;;  %1151 = vmatpush.msrb.mxu1 %v1826_v28 }
0x102d   :  { %769 = vmatpush.msrb.mxu2 %v1784_v58  ;;  %1152 = vmatpush.msrb.mxu1 %v1829_v29 }
0x102f   :  { %770 = vmatpush.msrb.mxu2 %v1790_v59  ;;  %1153 = vmatpush.msrb.mxu1 %v1832_v30 }
0x1030   :  { %1445 = vmatmul.msk.f32.vlgmr.msra.gmra.mxu2 %vm72_vm4, %v1765_v27  ;;  %1452 = vmatmul.msk.f32.vlgmr.msra.gmra.mxu1 %vm72_vm4, %v1896_v40 }
0x1031   :  { %949 = vmatpush.msra.mxu2 %v1824_v26 }
0x1033   :  { %950 = vmatpush.msra.mxu2 %v1826_v28 }
0x1035   :  { %951 = vmatpush.msra.mxu2 %v1829_v29 }
0x1037   :  { %952 = vmatpush.msra.mxu2 %v1832_v30 }
0x10a5   :  { %v1908_v42 = vpop.f32.mrf.mxu1 }
0x10ab   :  { %v506_v43 = vpop.f32.mrf.mxu2 }
0x10ac   :  { %v507_v44 = vadd.f32 %v1728_v5, %v506_v43 }
0x10ad   :  { %v887_v45 = vpop.f32.mrf.mxu1 }
0x10ae   :  { %v888_v27 = vadd.f32 %v1860_v4, %v887_v45  ;;  %532 = vrot.lane.b32.xlu2 %v507_v44, %s1657_s24  ;;  %v511_v47 = vadd.f32 %v1438_v46, %v507_v44 }
0x10b0   :  { %911 = vrot.lane.b32.xlu0 %v888_v27, %s1657_s24  ;;  %v1439_v48 = vmul.f32 -1.442695, %v511_v47  ;;  %v890_v52 = vadd.f32 %v888_v27, %v673_v51 }
0x10b2   :  { %1520 = vpow2.f32 %v1439_v48  ;;  %v1453_v54 = vmul.f32 -1.442695, %v890_v52 }
0x10b8   :  { %v1521_v49 = vpop.eup %1520 }
0x10b9   :  { %v515_v50 = vadd.f32 1.0, %v1521_v49 }
0x10bb   :  { %1522 = vrcp.f32 %v515_v50  ;;  %v527_v3 = vand.u32 2147483648, %v515_v50  ;;  %vm521_vm15 = vweird.f32 %v515_v50  ;;  %v525_v6 = vand.u32 2147483647, %v515_v50 }
0x10bc   :  { %1524 = vpow2.f32 %v1453_v54 }
0x10bd   :  { %v528_v8 = vor.u32 1.1754944e-38, %v527_v3  ;;  %vm526_vm1 = vcmp.eq.f32.partialorder %v525_v6, 8.507059e+37 }
0x10c1   :  { %v1523_v53 = vpop.eup %1522 }
0x10c2   :  { %v517_v55 = vmul.f32 %v1523_v53, %v515_v50  ;;  %v1525_v0 = vpop.eup %1524  ;;  %vm522_vm14 = vweird.f32 %v1523_v53  ;;  %v1441_v50 = vld [vmem:[%s2061_s0 + $0xe] sm:$0x3] }
0x10c3   :  { %v894_v2 = vadd.f32 1.0, %v1525_v0  ;;  %vm523_vm0 = vmor %vm521_vm15, %vm522_vm14 }
0x10c4   :  { %v518_v62 = vsub.f32 1.0, %v517_v55 }
0x10c5   :  { %1526 = vrcp.f32 %v894_v2  ;;  %v906_v16 = vand.u32 2147483648, %v894_v2  ;;  %vm900_vm3 = vweird.f32 %v894_v2  ;;  %v904_v17 = vand.u32 2147483647, %v894_v2 }
0x10c6   :  { %v519_v63 = vmul.f32 %v1523_v53, %v518_v62 }
0x10c7   :  { %v907_v19 = vor.u32 1.1754944e-38, %v906_v16  ;;  %vm905_vm6 = vcmp.eq.f32.partialorder %v904_v17, 8.507059e+37 }
0x10c8   :  { %v520_v1 = vadd.f32 %v1523_v53, %v519_v63 }
0x10ca   :  { %v524_v7 = vsel %vm523_vm0, %v1523_v53, %v520_v1 }
0x10cb   :  { %v529_v10 = vsel %vm526_vm1, %v528_v8, %v524_v7  ;;  %v1527_v11 = vpop.eup %1526 }
0x10cc   :  { %v896_v12 = vmul.f32 %v1527_v11, %v894_v2  ;;  %vm901_vm2 = vweird.f32 %v1527_v11 }
0x10cd   :  { %vm902_vm5 = vmor %vm900_vm3, %vm901_vm2 }
0x10ce   :  { %v897_v13 = vsub.f32 1.0, %v896_v12 }
0x10d0   :  { %v898_v14 = vmul.f32 %v1527_v11, %v897_v13 }
0x10d2   :  { %v899_v15 = vadd.f32 %v1527_v11, %v898_v14 }
0x10d4   :  { %v903_v18 = vsel %vm902_vm5, %v1527_v11, %v899_v15 }
0x10d5   :  { %v908_v21 = vsel %vm905_vm6, %v907_v19, %v903_v18 }
0x1108   :  { %v533_v9 = vpop.permute.xlu2 %532 }
0x1109   :  { %v535_v33 = vmul.f32 %v533_v9, %v529_v10 }
0x110b   :  { %537 = vrot.lane.b32.xlu1 %v535_v33, %s1657_s24 }
0x1122   :  { %v912_v20 = vpop.permute.xlu0 %911 }
0x1123   :  { %v914_v22 = vmul.f32 %v912_v20, %v908_v21 }
0x1125   :  { %916 = vrot.lane.b32.xlu2 %v914_v22, %s1657_s24 }
0x117d   :  { %v538_v23 = vpop.permute.xlu1 %537 }
0x117e   :  { %v540_v24 = vadd.f32 %v1438_v46, %v538_v23 }
0x117f   :  { %v917_v31 = vpop.permute.xlu2 %916 }
0x1180   :  { %1528 = vtanh.f32 %v540_v24  ;;  %v919_v32 = vadd.f32 %v917_v31, %v673_v51 }
0x1182   :  { %1530 = vtanh.f32 %v919_v32 }
0x1186   :  { %v1529_v34 = vpop.eup %1528 }
0x1187   :  { %v542_v36 = vsub.f32 %v1884_v39, %v1529_v34 }
0x1188   :  { %v1531_v37 = vpop.eup %1530 }
0x1189   :  { %544 = vrot.lane.b32.xlu0 %v542_v36, %s1658_s3  ;;  %v921_v25 = vsub.f32 %v1880_v61, %v1531_v37 }
0x118b   :  { %923 = vrot.lane.b32.xlu1 %v921_v25, %s1658_s3 }
0x11fb   :  { %v545_v41 = vpop.permute.xlu0 %544 }
0x11fc   :  { %v547_v43 = vmul.f32 %v545_v41, %v529_v10 }
0x11fd   :  { %v924_v44 = vpop.permute.xlu1 %923 }
0x11fe   :  { %v926_v45 = vmul.f32 %v924_v44, %v908_v21  ;;  %549 = vrot.lane.b32.xlu2 %v547_v43, %s1659_s27 }
0x1200   :  { %928 = vrot.lane.b32.xlu0 %v926_v45, %s1659_s27 }
0x1258   :  { %v550_v27 = vpop.permute.xlu2 %549 }
0x1259   :  { %v1926_v46 = vadd.f32 %v1529_v34, %v550_v27 }
0x125b   :  { %554 = vrot.lane.b32.xlu1 %v1926_v46, %s1657_s24 }
0x1272   :  { %v929_v39 = vpop.permute.xlu0 %928 }
0x1273   :  { %v1930_v47 = vadd.f32 %v1531_v37, %v929_v39 }
0x1275   :  { %933 = vrot.lane.b32.xlu2 %v1930_v47, %s1657_s24 }
0x12cd   :  { %v555_v61 = vpop.permute.xlu1 %554 }
0x12ce   :  { %1440 = vmatmul.msk.f32.vlgmr.msrb.gmra.mxu3 %vm72_vm4, %v555_v61  ;;  %1449 = vmatmul.msk.f32.vlgmr.msrb.gmra.mxu2 %vm72_vm4, %v555_v61 }
0x12cf   :  { %792 = vmatpush.msrb.mxu3 %v1778_v56  ;;  %1217 = vmatpush.msrb.mxu2 %v1824_v26  ;;  %v1942_v48 = vpop.permute.xlu2 %933  ;;  %v692_v56 = vpop.f32.mrf.mxu2 }
0x12d0   :  { %v693_v53 = vadd.f32 %v1867_v38, %v692_v56 }
0x12d1   :  { %793 = vmatpush.msrb.mxu3 %v1780_v57  ;;  %1218 = vmatpush.msrb.mxu2 %v1826_v28 }
0x12d3   :  { %794 = vmatpush.msrb.mxu3 %v1784_v58  ;;  %1219 = vmatpush.msrb.mxu2 %v1829_v29 }
0x12d5   :  { %795 = vmatpush.msrb.mxu3 %v1790_v59  ;;  %1220 = vmatpush.msrb.mxu2 %v1832_v30 }
0x12d6   :  { %1446 = vmatmul.msk.f32.vlgmr.msra.gmra.mxu3 %vm72_vm4, %v1802_v60  ;;  %1454 = vmatmul.msk.f32.vlgmr.msra.gmra.mxu2 %vm72_vm4, %v1942_v48 }
0x12d7   :  { %1016 = vmatpush.msra.mxu3 %v1824_v26 }
0x12d9   :  { %1017 = vmatpush.msra.mxu3 %v1826_v28 }
0x12db   :  { %1018 = vmatpush.msra.mxu3 %v1829_v29 }
0x12dd   :  { %1019 = vmatpush.msra.mxu3 %v1832_v30 }
0x1351   :  { %v575_v57 = vpop.f32.mrf.mxu3  ;;  %v1954_v58 = vpop.f32.mrf.mxu2 }
0x1352   :  { %v576_v59 = vadd.f32 %v1728_v5, %v575_v57 }
0x1354   :  { %601 = vrot.lane.b32.xlu0 %v576_v59, %s1657_s24  ;;  %v580_v51 = vadd.f32 %v1441_v50, %v576_v59 }
0x1356   :  { %v1442_v52 = vmul.f32 -1.442695, %v580_v51 }
0x1358   :  { %1532 = vpow2.f32 %v1442_v52 }
0x1359   :  { %v954_v60 = vpop.f32.mrf.mxu2 }
0x135a   :  { %v955_v49 = vadd.f32 %v1860_v4, %v954_v60 }
0x135c   :  { %978 = vrot.lane.b32.xlu1 %v955_v49, %s1657_s24  ;;  %v957_v54 = vadd.f32 %v955_v49, %v693_v53  ;;  %v712_v49 = vpop.f32.mrf.mxu3 }
0x135e   :  { %v1455_v55 = vmul.f32 -1.442695, %v957_v54  ;;  %v1533_v62 = vpop.eup %1532 }
0x135f   :  { %v584_v5 = vadd.f32 1.0, %v1533_v62 }
0x1360   :  { %1534 = vpow2.f32 %v1455_v55 }
0x1361   :  { %1536 = vrcp.f32 %v584_v5  ;;  %v596_v33 = vand.u32 2147483648, %v584_v5  ;;  %vm590_vm8 = vweird.f32 %v584_v5  ;;  %v594_v11 = vand.u32 2147483647, %v584_v5 }
0x1363   :  { %v597_v14 = vor.u32 1.1754944e-38, %v596_v33  ;;  %vm595_vm10 = vcmp.eq.f32.partialorder %v594_v11, 8.507059e+37 }
0x1366   :  { %v1535_v63 = vpop.eup %1534 }
0x1367   :  { %v961_v0 = vadd.f32 1.0, %v1535_v63  ;;  %v1537_v1 = vpop.eup %1536 }
0x1368   :  { %v586_v2 = vmul.f32 %v1537_v1, %v584_v5  ;;  %vm591_vm7 = vweird.f32 %v1537_v1 }
0x1369   :  { %1538 = vrcp.f32 %v961_v0  ;;  %vm592_vm9 = vmor %vm590_vm8, %vm591_vm7  ;;  %v973_v19 = vand.u32 2147483648, %v961_v0  ;;  %vm967_vm12 = vweird.f32 %v961_v0  ;;  %v971_v20 = vand.u32 2147483647, %v961_v0 }
0x136a   :  { %v587_v3 = vsub.f32 1.0, %v586_v2 }
0x136b   :  { %v974_v22 = vor.u32 1.1754944e-38, %v973_v19  ;;  %vm972_vm14 = vcmp.eq.f32.partialorder %v971_v20, 8.507059e+37  ;;  %v733_v19 = vadd.f32 %v1867_v38, %v1853_v35 }
0x136c   :  { %v588_v7 = vmul.f32 %v1537_v1, %v587_v3 }
0x136e   :  { %v589_v9 = vadd.f32 %v1537_v1, %v588_v7 }
0x136f   :  { %v1539_v6 = vpop.eup %1538 }
0x1370   :  { %v963_v8 = vmul.f32 %v1539_v6, %v961_v0  ;;  %v593_v12 = vsel %vm592_vm9, %v1537_v1, %v589_v9  ;;  %vm968_vm11 = vweird.f32 %v1539_v6 }
0x1371   :  { %v598_v16 = vsel %vm595_vm10, %v597_v14, %v593_v12  ;;  %vm969_vm13 = vmor %vm967_vm12, %vm968_vm11 }
0x1372   :  { %v964_v10 = vsub.f32 1.0, %v963_v8 }
0x1374   :  { %v965_v13 = vmul.f32 %v1539_v6, %v964_v10 }
0x1376   :  { %v966_v18 = vadd.f32 %v1539_v6, %v965_v13 }
0x1378   :  { %v970_v21 = vsel %vm969_vm13, %v1539_v6, %v966_v18 }
0x1379   :  { %v975_v24 = vsel %vm972_vm14, %v974_v22, %v970_v21 }
0x13c6   :  { %v602_v15 = vpop.permute.xlu0 %601 }
0x13c7   :  { %v604_v17 = vmul.f32 %v602_v15, %v598_v16 }
0x13c9   :  { %606 = vrot.lane.b32.xlu2 %v604_v17, %s1657_s24 }
0x13ce   :  { %v979_v23 = vpop.permute.xlu1 %978 }
0x13cf   :  { %v981_v31 = vmul.f32 %v979_v23, %v975_v24 }
0x13d1   :  { %983 = vrot.lane.b32.xlu0 %v981_v31, %s1657_s24 }
0x1423   :  { %v607_v32 = vpop.permute.xlu2 %606 }
0x1424   :  { %v609_v34 = vadd.f32 %v1441_v50, %v607_v32 }
0x1426   :  { %1540 = vtanh.f32 %v609_v34 }
0x142c   :  { %v1541_v36 = vpop.eup %1540 }
0x142d   :  { %v611_v37 = vsub.f32 %v1926_v46, %v1541_v36 }
0x142f   :  { %613 = vrot.lane.b32.xlu1 %v611_v37, %s1658_s3 }
0x1443   :  { %v984_v25 = vpop.permute.xlu0 %983 }
0x1444   :  { %v986_v41 = vadd.f32 %v984_v25, %v693_v53 }
0x1446   :  { %1542 = vtanh.f32 %v986_v41 }
0x144c   :  { %v1543_v43 = vpop.eup %1542 }
0x144d   :  { %v988_v44 = vsub.f32 %v1930_v47, %v1543_v43 }
0x144f   :  { %990 = vrot.lane.b32.xlu2 %v988_v44, %s1658_s3 }
0x14a1   :  { %v614_v45 = vpop.permute.xlu1 %613 }
0x14a2   :  { %v616_v27 = vmul.f32 %v614_v45, %v598_v16 }
0x14a4   :  { %618 = vrot.lane.b32.xlu0 %v616_v27, %s1659_s27 }
0x14a9   :  { %v991_v39 = vpop.permute.xlu2 %990 }
0x14aa   :  { %v993_v61 = vmul.f32 %v991_v39, %v975_v24 }
0x14ac   :  { %995 = vrot.lane.b32.xlu1 %v993_v61, %s1659_s27 }
0x1516   :  { %v619_v56 = vpop.permute.xlu0 %618 }
0x1517   :  { %v621_v46 = vadd.f32 %v1541_v36, %v619_v56 }
0x1519   :  { %776 = vrot.lane.b32.xlu2 %v621_v46, %s1657_s24 }
0x151e   :  { %v996_v57 = vpop.permute.xlu1 %995 }
0x151f   :  { %v998_v59 = vadd.f32 %v1543_v43, %v996_v57 }
0x1521   :  { %1000 = vrot.lane.b32.xlu0 %v998_v59, %s1657_s24 }
0x1573   :  { %v777_v60 = vpop.permute.xlu2 %776 }
0x1574   :  { %1450 = vmatmul.msk.f32.vlgmr.msrb.gmra.mxu3 %vm72_vm4, %v777_v60 }
0x1575   :  { %1284 = vmatpush.msrb.mxu3 %v1824_v26  ;;  %v713_v26 = vadd.f32 %v1867_v38, %v712_v49 }
0x1577   :  { %1285 = vmatpush.msrb.mxu3 %v1826_v28 }
0x1579   :  { %1286 = vmatpush.msrb.mxu3 %v1829_v29 }
0x157b   :  { %1287 = vmatpush.msrb.mxu3 %v1832_v30 }
0x1593   :  { %v1979_v47 = vpop.permute.xlu0 %1000 }
0x1594   :  { %1456 = vmatmul.msk.f32.vlgmr.msra.gmra.mxu3 %vm72_vm4, %v1979_v47 }
0x15f7   :  { %v1983_v50 = vpop.f32.mrf.mxu3 }
0x1617   :  { %v1021_v51 = vpop.f32.mrf.mxu3 }
0x1618   :  { %v1022_v52 = vadd.f32 %v1860_v4, %v1021_v51 }
0x161a   :  { %1045 = vrot.lane.b32.xlu1 %v1022_v52, %s1657_s24  ;;  %v1024_v28 = vadd.f32 %v1022_v52, %v713_v26 }
0x161c   :  { %v1457_v53 = vmul.f32 -1.442695, %v1024_v28 }
0x161e   :  { %1544 = vpow2.f32 %v1457_v53 }
0x1624   :  { %v1545_v29 = vpop.eup %1544 }
0x1625   :  { %v1028_v30 = vadd.f32 1.0, %v1545_v29 }
0x1627   :  { %1546 = vrcp.f32 %v1028_v30  ;;  %v1040_v0 = vand.u32 2147483648, %v1028_v30  ;;  %vm1034_vm0 = vweird.f32 %v1028_v30  ;;  %v1038_v1 = vand.u32 2147483647, %v1028_v30 }
0x1629   :  { %v1041_v3 = vor.u32 1.1754944e-38, %v1040_v0  ;;  %vm1039_vm2 = vcmp.eq.f32.partialorder %v1038_v1, 8.507059e+37 }
0x162d   :  { %v1547_v54 = vpop.eup %1546 }
0x162e   :  { %v1030_v55 = vmul.f32 %v1547_v54, %v1028_v30  ;;  %vm1035_vm15 = vweird.f32 %v1547_v54 }
0x162f   :  { %vm1036_vm1 = vmor %vm1034_vm0, %vm1035_vm15 }
0x1630   :  { %v1031_v62 = vsub.f32 1.0, %v1030_v55 }
0x1632   :  { %v1032_v5 = vmul.f32 %v1547_v54, %v1031_v62 }
0x1634   :  { %v1033_v63 = vadd.f32 %v1547_v54, %v1032_v5 }
0x1636   :  { %v1037_v2 = vsel %vm1036_vm1, %v1547_v54, %v1033_v63 }
0x1637   :  { %v1042_v7 = vsel %vm1039_vm2, %v1041_v3, %v1037_v2 }
0x168c   :  { %v1046_v6 = vpop.permute.xlu1 %1045 }
0x168d   :  { %v1048_v8 = vmul.f32 %v1046_v6, %v1042_v7 }
0x168f   :  { %1050 = vrot.lane.b32.xlu2 %v1048_v8, %s1657_s24 }
0x16e9   :  { %v1051_v9 = vpop.permute.xlu2 %1050 }
0x16ea   :  { %v1053_v10 = vadd.f32 %v1051_v9, %v713_v26  ;;  %v753_v26 = vadd.f32 %v1867_v38, %v1908_v42 }
0x16ec   :  { %1548 = vtanh.f32 %v1053_v10 }
0x16f2   :  { %v1549_v33 = vpop.eup %1548 }
0x16f3   :  { %v1055_v11 = vsub.f32 %v998_v59, %v1549_v33 }
0x16f5   :  { %1057 = vrot.lane.b32.xlu0 %v1055_v11, %s1658_s3 }
0x1767   :  { %v1058_v12 = vpop.permute.xlu0 %1057 }
0x1768   :  { %v1060_v13 = vmul.f32 %v1058_v12, %v1042_v7 }
0x176a   :  { %1062 = vrot.lane.b32.xlu1 %v1060_v13, %s1659_s27 }
0x17dc   :  { %v1063_v14 = vpop.permute.xlu1 %1062 }
0x17dd   :  { %v1065_v15 = vadd.f32 %v1549_v33, %v1063_v14 }
0x17df   :  { %1067 = vrot.lane.b32.xlu2 %v1065_v15, %s1657_s24 }
0x1839   :  { %v1992_v16 = vpop.permute.xlu2 %1067 }
0x183a   :  { %1458 = vmatmul.msk.f32.vlgmr.msrb.gmra.mxu0 %vm72_vm4, %v1992_v16 }
0x18b7   :  { %v1088_v17 = vpop.f32.mrf.mxu0 }
0x18b8   :  { %v1089_v18 = vadd.f32 %v1860_v4, %v1088_v17 }
0x18ba   :  { %1112 = vrot.lane.b32.xlu0 %v1089_v18, %s1657_s24  ;;  %v1091_v20 = vadd.f32 %v1089_v18, %v733_v19 }
0x18bc   :  { %v1459_v21 = vmul.f32 -1.442695, %v1091_v20 }
0x18be   :  { %1550 = vpow2.f32 %v1459_v21 }
0x18c4   :  { %v1551_v22 = vpop.eup %1550 }
0x18c5   :  { %v1095_v23 = vadd.f32 1.0, %v1551_v22 }
0x18c7   :  { %1552 = vrcp.f32 %v1095_v23  ;;  %v1107_v37 = vand.u32 2147483648, %v1095_v23  ;;  %vm1101_vm5 = vweird.f32 %v1095_v23  ;;  %v1105_v25 = vand.u32 2147483647, %v1095_v23 }
0x18c9   :  { %v1108_v43 = vor.u32 1.1754944e-38, %v1107_v37  ;;  %vm1106_vm7 = vcmp.eq.f32.partialorder %v1105_v25, 8.507059e+37 }
0x18cd   :  { %v1553_v24 = vpop.eup %1552 }
0x18ce   :  { %v1097_v31 = vmul.f32 %v1553_v24, %v1095_v23  ;;  %vm1102_vm3 = vweird.f32 %v1553_v24 }
0x18cf   :  { %vm1103_vm6 = vmor %vm1101_vm5, %vm1102_vm3  ;;  %vm1335_vm3 = vcmask 254976   ;;  %vm1342_vm5 = vcmask 1024  }
0x18d0   :  { %v1098_v32 = vsub.f32 1.0, %v1097_v31 }
0x18d2   :  { %v1099_v34 = vmul.f32 %v1553_v24, %v1098_v32 }
0x18d4   :  { %v1100_v36 = vadd.f32 %v1553_v24, %v1099_v34 }
0x18d6   :  { %v1104_v41 = vsel %vm1103_vm6, %v1553_v24, %v1100_v36  ;;  %vm1350_vm6 = vcmask 9224  }
0x18d7   :  { %v1109_v44 = vsel %vm1106_vm7, %v1108_v43, %v1104_v41  ;;  %vm1358_vm7 = vcmask 17424  }
0x192c   :  { %v1113_v35 = vpop.permute.xlu0 %1112 }
0x192d   :  { %v1115_v45 = vmul.f32 %v1113_v35, %v1109_v44 }
0x192f   :  { %1117 = vrot.lane.b32.xlu1 %v1115_v45, %s1657_s24 }
0x19a1   :  { %v1118_v27 = vpop.permute.xlu1 %1117 }
0x19a2   :  { %v1120_v39 = vadd.f32 %v1118_v27, %v733_v19  ;;  %v773_v19 = vadd.f32 %v1867_v38, %v1954_v58 }
0x19a4   :  { %1554 = vtanh.f32 %v1120_v39 }
0x19aa   :  { %v1555_v61 = vpop.eup %1554 }
0x19ab   :  { %v1122_v56 = vsub.f32 %v1065_v15, %v1555_v61 }
0x19ad   :  { %1124 = vrot.lane.b32.xlu2 %v1122_v56, %s1658_s3 }
0x1a07   :  { %v1125_v46 = vpop.permute.xlu2 %1124 }
0x1a08   :  { %v1127_v57 = vmul.f32 %v1125_v46, %v1109_v44 }
0x1a0a   :  { %1129 = vrot.lane.b32.xlu0 %v1127_v57, %s1659_s27 }
0x1a7c   :  { %v1130_v59 = vpop.permute.xlu0 %1129 }
0x1a7d   :  { %v1132_v60 = vadd.f32 %v1555_v61, %v1130_v59 }
0x1a7f   :  { %1134 = vrot.lane.b32.xlu1 %v1132_v60, %s1657_s24 }
0x1af1   :  { %v2004_v49 = vpop.permute.xlu1 %1134 }
0x1af2   :  { %1460 = vmatmul.msk.f32.vlgmr.msrb.gmra.mxu1 %vm72_vm4, %v2004_v49 }
0x1b6f   :  { %v1155_v51 = vpop.f32.mrf.mxu1 }
0x1b70   :  { %v1156_v52 = vadd.f32 %v1860_v4, %v1155_v51 }
0x1b72   :  { %1179 = vrot.lane.b32.xlu2 %v1156_v52, %s1657_s24  ;;  %v1158_v28 = vadd.f32 %v1156_v52, %v753_v26 }
0x1b74   :  { %v1461_v53 = vmul.f32 -1.442695, %v1158_v28 }
0x1b76   :  { %1556 = vpow2.f32 %v1461_v53 }
0x1b7c   :  { %v1557_v29 = vpop.eup %1556 }
0x1b7d   :  { %v1162_v30 = vadd.f32 1.0, %v1557_v29 }
0x1b7f   :  { %1558 = vrcp.f32 %v1162_v30  ;;  %v1174_v0 = vand.u32 2147483648, %v1162_v30  ;;  %vm1168_vm9 = vweird.f32 %v1162_v30  ;;  %v1172_v1 = vand.u32 2147483647, %v1162_v30 }
0x1b81   :  { %v1175_v3 = vor.u32 1.1754944e-38, %v1174_v0  ;;  %vm1173_vm11 = vcmp.eq.f32.partialorder %v1172_v1, 8.507059e+37 }
0x1b85   :  { %v1559_v54 = vpop.eup %1558 }
0x1b86   :  { %v1164_v55 = vmul.f32 %v1559_v54, %v1162_v30  ;;  %vm1169_vm8 = vweird.f32 %v1559_v54 }
0x1b87   :  { %vm1170_vm10 = vmor %vm1168_vm9, %vm1169_vm8  ;;  %vm1366_vm8 = vcmask 25624   ;;  %vm1374_vm9 = vcmask 33824  }
0x1b88   :  { %v1165_v62 = vsub.f32 1.0, %v1164_v55 }
0x1b8a   :  { %v1166_v5 = vmul.f32 %v1559_v54, %v1165_v62 }
0x1b8c   :  { %v1167_v63 = vadd.f32 %v1559_v54, %v1166_v5 }
0x1b8e   :  { %v1171_v2 = vsel %vm1170_vm10, %v1559_v54, %v1167_v63  ;;  %vm1382_vm10 = vcmask 42024  }
0x1b8f   :  { %v1176_v6 = vsel %vm1173_vm11, %v1175_v3, %v1171_v2  ;;  %vm1390_vm11 = vcmask 50224  }
0x1bcc   :  { %v1180_v42 = vpop.permute.xlu2 %1179 }
0x1bcd   :  { %v1182_v7 = vmul.f32 %v1180_v42, %v1176_v6 }
0x1bcf   :  { %1184 = vrot.lane.b32.xlu0 %v1182_v7, %s1657_s24 }
0x1c41   :  { %v1185_v8 = vpop.permute.xlu0 %1184 }
0x1c42   :  { %v1187_v9 = vadd.f32 %v1185_v8, %v753_v26  ;;  %v798_v26 = vadd.f32 %v1867_v38, %v1983_v50 }
0x1c44   :  { %1560 = vtanh.f32 %v1187_v9  ;;  %v1336_v9 = vsel %vm1335_vm3, %v1896_v40, 0.0 }
0x1c4a   :  { %v1561_v10 = vpop.eup %1560 }
0x1c4b   :  { %v1189_v33 = vsub.f32 %v1132_v60, %v1561_v10 }
0x1c4d   :  { %1191 = vrot.lane.b32.xlu1 %v1189_v33, %s1658_s3  ;;  %v1369_v33 = vsel %vm1335_vm3, %v2004_v49, 0.0 }
0x1cbf   :  { %v1192_v11 = vpop.permute.xlu1 %1191 }
0x1cc0   :  { %v1194_v12 = vmul.f32 %v1192_v11, %v1176_v6 }
0x1cc2   :  { %1196 = vrot.lane.b32.xlu2 %v1194_v12, %s1659_s27 }
0x1d1c   :  { %v1197_v13 = vpop.permute.xlu2 %1196 }
0x1d1d   :  { %v1199_v14 = vadd.f32 %v1561_v10, %v1197_v13  ;;  %v1361_v10 = vsel %vm1335_vm3, %v1992_v16, 0.0  ;;  %v1345_v13 = vsel %vm1335_vm3, %v1942_v48, 0.0  ;;  %v1339_v16 = vstv %s2062_s1  ;;  %s1660_s1 = smov [#allocation8]  }
0x1d1e   :  { %s1408_s21 = sshll.u32 %s1660_s1, 4  ;;  %s1409_s21 = int_to_ptr.vmem [resolvable:$true] %s1408_s21 }
0x1d1f   :  { %1201 = vrot.lane.b32.xlu0 %v1199_v14, %s1657_s24 }
0x1d91   :  { %v2016_v15 = vpop.permute.xlu0 %1201 }
0x1d92   :  { %1462 = vmatmul.msk.f32.vlgmr.msrb.gmra.mxu2 %vm72_vm4, %v2016_v15  ;;  %v1377_v40 = vsel %vm1335_vm3, %v2016_v15, 0.0 }
0x1e15   :  { %v1222_v17 = vpop.f32.mrf.mxu2 }
0x1e16   :  { %v1223_v18 = vadd.f32 %v1860_v4, %v1222_v17 }
0x1e18   :  { %1246 = vrot.lane.b32.xlu1 %v1223_v18, %s1657_s24  ;;  %v1225_v20 = vadd.f32 %v1223_v18, %v773_v19 }
0x1e1a   :  { %v1463_v21 = vmul.f32 -1.442695, %v1225_v20 }
0x1e1c   :  { %1562 = vpow2.f32 %v1463_v21  ;;  %v1353_v21 = vsel %vm1335_vm3, %v1979_v47, 0.0 }
0x1e22   :  { %v1563_v22 = vpop.eup %1562 }
0x1e23   :  { %v1229_v23 = vadd.f32 1.0, %v1563_v22 }
0x1e25   :  { %1564 = vrcp.f32 %v1229_v23  ;;  %v1241_v37 = vand.u32 2147483648, %v1229_v23  ;;  %vm1235_vm13 = vweird.f32 %v1229_v23  ;;  %v1239_v25 = vand.u32 2147483647, %v1229_v23 }
0x1e27   :  { %v1242_v43 = vor.u32 1.1754944e-38, %v1241_v37  ;;  %vm1240_vm15 = vcmp.eq.f32.partialorder %v1239_v25, 8.507059e+37 }
0x1e2b   :  { %v1565_v24 = vpop.eup %1564 }
0x1e2c   :  { %v1231_v31 = vmul.f32 %v1565_v24, %v1229_v23  ;;  %vm1236_vm12 = vweird.f32 %v1565_v24 }
0x1e2d   :  { %vm1237_vm14 = vmor %vm1235_vm13, %vm1236_vm12  ;;  %vm1401_vm12 = vcmask 58424  }
0x1e2e   :  { %v1232_v32 = vsub.f32 1.0, %v1231_v31 }
0x1e30   :  { %v1233_v34 = vmul.f32 %v1565_v24, %v1232_v32 }
0x1e32   :  { %v1234_v36 = vadd.f32 %v1565_v24, %v1233_v34 }
0x1e34   :  { %v1238_v41 = vsel %vm1237_vm14, %v1565_v24, %v1234_v36 }
0x1e35   :  { %v1243_v35 = vsel %vm1240_vm15, %v1242_v43, %v1238_v41 }
0x1e8a   :  { %v1247_v58 = vpop.permute.xlu1 %1246 }
0x1e8b   :  { %v1249_v44 = vmul.f32 %v1247_v58, %v1243_v35 }
0x1e8d   :  { %1251 = vrot.lane.b32.xlu2 %v1249_v44, %s1657_s24 }
0x1ee7   :  { %v1252_v45 = vpop.permute.xlu2 %1251 }
0x1ee8   :  { %v1254_v27 = vadd.f32 %v1252_v45, %v773_v19 }
0x1eea   :  { %1566 = vtanh.f32 %v1254_v27 }
0x1ef0   :  { %v1567_v39 = vpop.eup %1566 }
0x1ef1   :  { %v1256_v61 = vsub.f32 %v1199_v14, %v1567_v39 }
0x1ef3   :  { %1258 = vrot.lane.b32.xlu0 %v1256_v61, %s1658_s3 }
0x1f65   :  { %v1259_v56 = vpop.permute.xlu0 %1258 }
0x1f66   :  { %v1261_v46 = vmul.f32 %v1259_v56, %v1243_v35 }
0x1f68   :  { %1263 = vrot.lane.b32.xlu1 %v1261_v46, %s1659_s27 }
0x1fda   :  { %v1264_v57 = vpop.permute.xlu1 %1263 }
0x1fdb   :  { %v1266_v59 = vadd.f32 %v1567_v39, %v1264_v57 }
0x1fdd   :  { %1268 = vrot.lane.b32.xlu2 %v1266_v59, %s1657_s24 }
0x2037   :  { %v2028_v60 = vpop.permute.xlu2 %1268 }
0x2038   :  { %1464 = vmatmul.msk.f32.vlgmr.msrb.gmra.mxu3 %vm72_vm4, %v2028_v60  ;;  %v1385_v22 = vsel %vm1335_vm3, %v2028_v60, 0.0 }
0x20bb   :  { %v1289_v51 = vpop.f32.mrf.mxu3 }
0x20bc   :  { %v1290_v52 = vadd.f32 %v1860_v4, %v1289_v51 }
0x20be   :  { %1313 = vrot.lane.b32.xlu0 %v1290_v52, %s1657_s24  ;;  %v1292_v28 = vadd.f32 %v1290_v52, %v798_v26 }
0x20c0   :  { %v1465_v53 = vmul.f32 -1.442695, %v1292_v28 }
0x20c2   :  { %1568 = vpow2.f32 %v1465_v53 }
0x20c8   :  { %v1569_v29 = vpop.eup %1568 }
0x20c9   :  { %v1296_v30 = vadd.f32 1.0, %v1569_v29 }
0x20cb   :  { %1570 = vrcp.f32 %v1296_v30  ;;  %v1308_v0 = vand.u32 2147483648, %v1296_v30  ;;  %vm1302_vm0 = vweird.f32 %v1296_v30  ;;  %v1306_v4 = vand.u32 2147483647, %v1296_v30 }
0x20cd   :  { %v1309_v2 = vor.u32 1.1754944e-38, %v1308_v0  ;;  %vm1307_vm2 = vcmp.eq.f32.partialorder %v1306_v4, 8.507059e+37 }
0x20d1   :  { %v1571_v54 = vpop.eup %1570 }
0x20d2   :  { %v1298_v55 = vmul.f32 %v1571_v54, %v1296_v30  ;;  %vm1303_vm4 = vweird.f32 %v1571_v54 }
0x20d3   :  { %vm1304_vm1 = vmor %vm1302_vm0, %vm1303_vm4 }
0x20d4   :  { %v1299_v62 = vsub.f32 1.0, %v1298_v55 }
0x20d6   :  { %v1300_v5 = vmul.f32 %v1571_v54, %v1299_v62 }
0x20d8   :  { %v1301_v63 = vadd.f32 %v1571_v54, %v1300_v5 }
0x20da   :  { %v1305_v1 = vsel %vm1304_vm1, %v1571_v54, %v1301_v63 }
0x20db   :  { %v1310_v50 = vsel %vm1307_vm2, %v1309_v2, %v1305_v1 }
0x2130   :  { %v1314_v38 = vpop.permute.xlu0 %1313 }
0x2131   :  { %v1316_v3 = vmul.f32 %v1314_v38, %v1310_v50 }
0x2133   :  { %1318 = vrot.lane.b32.xlu1 %v1316_v3, %s1657_s24 }
0x21a5   :  { %v1319_v42 = vpop.permute.xlu1 %1318 }
0x21a6   :  { %v1321_v6 = vadd.f32 %v1319_v42, %v798_v26 }
0x21a8   :  { %1572 = vtanh.f32 %v1321_v6 }
0x21ae   :  { %v1573_v7 = vpop.eup %1572 }
0x21af   :  { %v1323_v8 = vsub.f32 %v1266_v59, %v1573_v7 }
0x21b1   :  { %1325 = vrot.lane.b32.xlu2 %v1323_v8, %s1658_s3 }
0x21da   :  { %1337 = vadd.xlane.f32.xlu2 %v1336_v9 }
0x21e2   :  { %1362 = vadd.xlane.f32.xlu2 %v1361_v10 }
0x21ea   :  { %1370 = vadd.xlane.f32.xlu2 %v1369_v33 }
0x220b   :  { %v1326_v11 = vpop.permute.xlu2 %1325 }
0x220c   :  { %v1328_v12 = vmul.f32 %v1326_v11, %v1310_v50 }
0x220e   :  { %1330 = vrot.lane.b32.xlu0 %v1328_v12, %s1659_s27 }
0x2238   :  { %1346 = vadd.xlane.f32.xlu0 %v1345_v13 }
0x2240   :  { %1378 = vadd.xlane.f32.xlu0 %v1377_v40 }
0x224d   :  { %v1338_v14 = vpop.xlane.xlu2 %1337 }
0x224e   :  { %v1340_v17 = vmul.f32 %v1339_v16, %v1338_v14 }
0x2250   :  { %v1341_v49 = vand.u32 2147483647, %v1340_v17 }
0x2252   :  { %1343 = vst.msk [vmem:[#allocation8] sm:$0x3] %vm1342_vm5, %v1341_v49 }
0x2255   :  { %v1363_v31 = vpop.xlane.xlu2 %1362 }
0x2256   :  { %v1364_v36 = vmul.f32 %v1363_v31, %v1339_v16 }
0x2258   :  { %v1365_v58 = vand.u32 2147483647, %v1364_v36 }
0x225d   :  { %v1371_v32 = vpop.xlane.xlu2 %1370 }
0x225e   :  { %v1372_v25 = vmul.f32 %v1371_v32, %v1339_v16 }
0x2260   :  { %v1373_v35 = vand.u32 2147483647, %v1372_v25 }
0x2280   :  { %v1331_v18 = vpop.permute.xlu0 %1330 }
0x2281   :  { %v1333_v19 = vadd.f32 %v1573_v7, %v1331_v18 }
0x2283   :  { %1393 = vrot.lane.b32.xlu1 %v1333_v19, %s1657_s24 }
0x22ab   :  { %v1347_v20 = vpop.xlane.xlu0 %1346 }
0x22ac   :  { %v1348_v48 = vmul.f32 %v1347_v20, %v1339_v16 }
0x22ad   :  { %1354 = vadd.xlane.f32.xlu1 %v1353_v21 }
0x22ae   :  { %v1349_v15 = vand.u32 2147483647, %v1348_v48 }
0x22b0   :  { %1351 = vst.msk [vmem:[#allocation8] sm:$0x3] %vm1350_vm6, %v1349_v15 }
0x22b3   :  { %v1379_v34 = vpop.xlane.xlu0 %1378 }
0x22b4   :  { %v1380_v47 = vmul.f32 %v1379_v34, %v1339_v16 }
0x22b5   :  { %1386 = vadd.xlane.f32.xlu1 %v1385_v22 }
0x22b6   :  { %v1381_v44 = vand.u32 2147483647, %v1380_v47 }
0x22f5   :  { %v1394_v23 = vpop.permute.xlu1 %1393 }
0x22f6   :  { %v1396_v24 = vsel %vm1335_vm3, %v1394_v23, 0.0 }
0x22f7   :  { %1397 = vadd.xlane.f32.xlu2 %v1396_v24 }
0x2320   :  { %v1355_v37 = vpop.xlane.xlu1 %1354 }
0x2321   :  { %v1356_v41 = vmul.f32 %v1355_v37, %v1339_v16 }
0x2323   :  { %v1357_v43 = vand.u32 2147483647, %v1356_v41 }
0x2325   :  { %1359 = vst.msk [vmem:[#allocation8] sm:$0x3] %vm1358_vm7, %v1357_v43 }
0x2326   :  { %1367 = vst.msk [vmem:[#allocation8] sm:$0x3] %vm1366_vm8, %v1365_v58 }
0x2327   :  { %1375 = vst.msk [vmem:[#allocation8] sm:$0x3] %vm1374_vm9, %v1373_v35 }
0x2328   :  { %v1387_v45 = vpop.xlane.xlu1 %1386  ;;  %1383 = vst.msk [vmem:[#allocation8] sm:$0x3] %vm1382_vm10, %v1381_v44 }
0x2329   :  { %v1388_v27 = vmul.f32 %v1387_v45, %v1339_v16 }
0x232b   :  { %v1389_v39 = vand.u32 2147483647, %v1388_v27 }
0x232d   :  { %1391 = vst.msk [vmem:[#allocation8] sm:$0x3] %vm1390_vm11, %v1389_v39 }
0x236a   :  { %v1398_v61 = vpop.xlane.xlu2 %1397 }
0x236b   :  { %v1399_v56 = vmul.f32 %v1398_v61, %v1339_v16 }
0x236d   :  { %v1400_v46 = vand.u32 2147483647, %v1399_v56 }
0x236f   :  { %1402 = vst.msk [vmem:[#allocation8] sm:$0x3] %vm1401_vm12, %v1400_v46 }
0x2370   :  { %1413 = dma.vmem_to_hbm [thread:$0]  %s1409_s21, 32, %s1411_s23, [#allocation5]  }
0x2371   :  { %1650 = dma.done.wait [#allocation5], 32  }
0x2372   :  { %1651 = vsyncadd [#allocation5], 4294967264 }
0x2373   :  { %1418 = vsyncpa [#allocation4], 1 }
0x2374   :  { %1419 = vsyncpa [#allocation7], 1 }
0x2375   :  { %1420 = vsyncpa [#allocation5], 1 }

</bundles_post_ra>
